<compile_context>
chip_gen: v5e
topology: v5e:2x2
jax: 0.10.0
libtpu: 0.0.40
codegen_flags: <defaults>
</compile_context>

<pallas_src>
from functools import partial

import jax
import jax.numpy as jnp
from jax import lax
from jax.experimental import pallas as pl
from jax.experimental.pallas import tpu as pltpu

BB = 8  # batch rows per grid block == one full sublane group


# ----------------------------------------------------------------------------
# Fused kernel: image-feature gates + token gates + 2-layer LSTM + vocab linear.
# One grid axis over batch blocks; the recurrence is batched over BB rows.
# ----------------------------------------------------------------------------
def caption_kernel(x_ref, mfold_ref, cfold_ref, cap_ref, tok_ref,
                   whh0_ref, w1_ref, b1_ref, wlin_ref, blin_ref,
                   o_ref,
                   gx0_s, seq1_s):
    # x_ref:    (BB, C*HW)  bf16  flattened NCHW image pixels for this batch block
    # mfold_ref:(C*HW, 4H)  bf16  folded conv -> mean-pool -> W_ih0[:2048] projection
    # cfold_ref:(1, 4H)     f32   folded bias (conv bias path + b0)
    # cap_ref:  (T*BB, 1)   i32   token ids, time-major (row t*BB + b)
    # tok_ref:  (Vp, 4H)    bf16  fused token table = embed @ W_ih0[2048:], V-padded
    # whh0_ref: (H, 4H)     f32   layer-0 recurrent weights (PyTorch i,f,g,o order)
    # w1_ref:   (2H, 4H)    f32   merged layer-1 weights [w_ih1; w_hh1]
    # b1_ref:   (1, 4H), wlin_ref: (H, Vp), blin_ref: (1, Vp)
    # o_ref:    (T*BB, Vp)  f32   logits, time-major, lane-dense
    # gx0_s:    (T*BB, 4H)  VMEM scratch (per-token layer-0 input gates, image pre-added)
    # seq1_s:   (T*BB, H)   VMEM scratch (layer-1 hidden states)
    TB = cap_ref.shape[0]
    Bb = x_ref.shape[0]
    T = TB // Bb
    H = whh0_ref.shape[0]
    Vp = tok_ref.shape[0]

    # (1) Image path: one bf16 MXU matmul gives the time-invariant layer-0 input gates
    #     contributed by the pooled CNN features for the whole batch block.
    gx_feat = jnp.dot(x_ref[...], mfold_ref[...],
                      preferred_element_type=jnp.float32) + cfold_ref[...]       # (BB, 4H)

    # (2) Token path: exact embedding row-select fused with the W_ih0 embedding block
    #     (one-hot is exact in bf16; fine at Vp=128).
    # TODO(synk): for captioning-scale vocab (10k+), replace the one-hot matmul with a
    #             scalar-prefetch (SMEM) caption table + DMA/row gather from tok_ref.
    onehot = (cap_ref[...] ==
              lax.broadcasted_iota(jnp.int32, (TB, Vp), 1)).astype(jnp.bfloat16)
    tok_gates = jnp.dot(onehot, tok_ref[...], preferred_element_type=jnp.float32)

    # (3) Pre-add the image gates over the whole sequence ONCE (off the serialized path).
    gx0_s[...] = tok_gates + jnp.tile(gx_feat, (T, 1))

    whh0 = whh0_ref[...]
    w1 = w1_ref[...]
    b1 = b1_ref[...]

    def gate_math(gates, c_prev):
        # PyTorch LSTM gate order: i, f, g, o (static lane slices of a (BB, 4H) tile).
        i_g = jax.nn.sigmoid(gates[:, 0 * H:1 * H])
        f_g = jax.nn.sigmoid(gates[:, 1 * H:2 * H])
        g_g = jnp.tanh(gates[:, 2 * H:3 * H])
        o_g = jax.nn.sigmoid(gates[:, 3 * H:4 * H])
        c_new = f_g * c_prev + i_g * g_g
        h_new = o_g * jnp.tanh(c_new)
        return h_new, c_new

    # (4) Both LSTM layers in one time loop; 2 MXU matmuls per step on the carry chain.
    def step(t, carry):
        h0, c0, h1, c1 = carry
        row = pl.multiple_of(t * Bb, Bb)                       # 8-sublane aligned slices
        g0 = gx0_s[pl.ds(row, Bb), :] + jnp.dot(h0, whh0,
                                                preferred_element_type=jnp.float32)
        h0, c0 = gate_math(g0, c0)
        g1 = jnp.dot(jnp.concatenate([h0, h1], axis=1), w1,
                     preferred_element_type=jnp.float32) + b1
        h1, c1 = gate_math(g1, c1)
        seq1_s[pl.ds(row, Bb), :] = h1
        return (h0, c0, h1, c1)

    z = jnp.zeros((Bb, H), jnp.float32)
    lax.fori_loop(0, T, step, (z, z, z, z), unroll=True)

    # (5) Final vocab linear over the whole sequence in one lane-dense matmul.
    o_ref[...] = jnp.dot(seq1_s[...], wlin_ref[...],
                         preferred_element_type=jnp.float32) + blin_ref[...]


# ----------------------------------------------------------------------------
# One-time parameter prep (hoisted out of the per-call forward path).
# ----------------------------------------------------------------------------
def prepare_params(params, image_shape):
    _, C, Hi, Wi = image_shape
    HW = Hi * Wi
    F = 2048                                   # hard-coded by `.view(B, -1, 2048)`
    # TODO(synk): real ResNet feature maps (e.g. 7x7=49) do not divide 2048; the exact
    #             view/mean fold only applies when HW | 2048 (true for this stand-in).
    assert F % HW == 0, "mean-pool fold assumes HW divides 2048"
    stride = F // HW
    Hs = params["w_hh0"].shape[0]
    V = params["w_lin"].shape[1]
    Vp = max(128, ((V + 127) // 128) * 128)    # lane-dense vocab padding

    # fold `.view(B,-1,2048).mean(1)` of the NCHW conv output into the conv weights.
    w_conv = params["w_conv"]                                   # (F, C)
    b_conv = params["b_conv"].reshape(F)                        # (F,)
    w_red = w_conv.reshape(HW, stride, C).mean(axis=0)          # (stride, C)
    b_red = b_conv.reshape(HW, stride).mean(axis=0)             # (stride,)

    # fold the reduced conv with the feature half of W_ih0 (rows 0..2047).
    w_ih0 = params["w_ih0"]                                     # (2048+E, 4H)
    w_feat_r = w_ih0[:F].reshape(stride, HW, 4 * Hs)            # [q, s, g]
    m_fold = jnp.einsum("qc,qsg->csg", w_red, w_feat_r).reshape(C * HW, 4 * Hs)
    c_fold = (jnp.einsum("q,qsg->g", b_red, w_feat_r) + params["b0"][0])[None, :]

    # fuse embedding table with the embedding half of W_ih0 (exact row-wise identity).
    # TODO(synk): out-of-range token ids select a zero (padded) row rather than raising
    #             like torch.nn.Embedding; inputs here are always in range.
    tok_tab = jnp.dot(params["embed"], w_ih0[F:])               # (V, 4H)
    tok_tab = jnp.zeros((Vp, 4 * Hs), jnp.float32).at[:V].set(tok_tab)

    # merged layer-1 weight so the recurrence needs one matmul for layer 1.
    w1 = jnp.concatenate([params["w_ih1"], params["w_hh1"]], axis=0)   # (2H, 4H)

    # lane-dense (V padded to 128) vocab linear.
    wlin = jnp.zeros((Hs, Vp), jnp.float32).at[:, :V].set(params["w_lin"])
    blin = jnp.zeros((1, Vp), jnp.float32).at[:, :V].set(params["b_lin"])

    return {
        "m_fold": m_fold.astype(jnp.bfloat16),
        "c_fold": c_fold.astype(jnp.float32),
        "tok_tab": tok_tab.astype(jnp.bfloat16),
        "w_hh0": params["w_hh0"].astype(jnp.float32),
        "w1": w1.astype(jnp.float32),
        "b1": params["b1"].astype(jnp.float32),
        "w_lin": wlin,
        "b_lin": blin,
    }


# ----------------------------------------------------------------------------
# Forward wrapper: layout prep only, one pallas_call.
# ----------------------------------------------------------------------------
@partial(jax.jit, static_argnames=("vocab_size",))
def caption_generator_forward(images, captions, prepped, *, vocab_size):
    B, C, Hi, Wi = images.shape
    T = captions.shape[1]
    K = C * Hi * Wi
    Hs = prepped["w_hh0"].shape[0]
    Vp = prepped["w_lin"].shape[1]

    NB = pl.cdiv(B, BB)          # batch blocks (parallel grid axis; 2 TCs on v7x)
    Bp = NB * BB                 # batch padded to full sublane groups

    # flattened NCHW pixels (row index c*HW + s), bf16 operands for the MXU.
    x_flat = (jnp.zeros((Bp, K), jnp.float32)
              .at[:B].set(images.reshape(B, K)).astype(jnp.bfloat16))

    # time-major token ids per batch block: row nb*(T*BB) + t*BB + j.
    cap_p = jnp.zeros((Bp, T), jnp.int32).at[:B].set(captions.astype(jnp.int32))
    cap_tb = cap_p.reshape(NB, BB, T).transpose(0, 2, 1).reshape(NB * T * BB, 1)

    grid_spec = pltpu.PrefetchScalarGridSpec(
        num_scalar_prefetch=0,
        grid=(NB,),
        in_specs=[
            pl.BlockSpec((BB, K), lambda nb: (nb, 0)),            # x_flat
            pl.BlockSpec((K, 4 * Hs), lambda nb: (0, 0)),         # m_fold
            pl.BlockSpec((1, 4 * Hs), lambda nb: (0, 0)),         # c_fold
            pl.BlockSpec((T * BB, 1), lambda nb: (nb, 0)),        # captions
            pl.BlockSpec((Vp, 4 * Hs), lambda nb: (0, 0)),        # tok_tab
            pl.BlockSpec((Hs, 4 * Hs), lambda nb: (0, 0)),        # w_hh0
            pl.BlockSpec((2 * Hs, 4 * Hs), lambda nb: (0, 0)),    # w1
            pl.BlockSpec((1, 4 * Hs), lambda nb: (0, 0)),         # b1
            pl.BlockSpec((Hs, Vp), lambda nb: (0, 0)),            # w_lin
            pl.BlockSpec((1, Vp), lambda nb: (0, 0)),             # b_lin
        ],
        out_specs=pl.BlockSpec((T * BB, Vp), lambda nb: (nb, 0)),
        scratch_shapes=[
            pltpu.VMEM((T * BB, 4 * Hs), jnp.float32),            # gx0_s
            pltpu.VMEM((T * BB, Hs), jnp.float32),                # seq1_s
        ],
    )

    # TODO(synk): at production image sizes, tile the C*HW contraction of m_fold with an
    #             extra grid axis + f32 accumulator (or hoist the image projection) so the
    #             resident set fits v7x's 64 MiB VMEM.
    out_flat = pl.pallas_call(
        caption_kernel,
        out_shape=jax.ShapeDtypeStruct((NB * T * BB, Vp), jnp.float32),
        grid_spec=grid_spec,
        compiler_params=pltpu.CompilerParams(
            dimension_semantics=("parallel",),
            vmem_limit_bytes=32 * 1024 * 1024,
        ),
    )(x_flat, prepped["m_fold"], prepped["c_fold"], cap_tb, prepped["tok_tab"],
      prepped["w_hh0"], prepped["w1"], prepped["b1"],
      prepped["w_lin"], prepped["b_lin"])

    # (nb, t, j, v) -> (B, T, V), dropping batch/vocab padding.
    out = out_flat.reshape(NB, T, BB, Vp).transpose(0, 2, 1, 3).reshape(Bp, T, Vp)
    return out[:B, :, :vocab_size]


# ----------------------------------------------------------------------------
# Pure-JAX reference (unfused) for validation.
# ----------------------------------------------------------------------------
def reference_forward(images, captions, params):
    B, C, Hi, Wi = images.shape
    T = captions.shape[1]
    x = images.reshape(B, C, Hi * Wi)
    conv = jnp.einsum("fc,bcs->bfs", params["w_conv"], x,
                      precision=lax.Precision.HIGHEST) + params["b_conv"][None]
    feats = conv.reshape(B, -1, 2048).mean(axis=1)
    emb = params["embed"][captions]
    feats_exp = jnp.broadcast_to(feats[:, None, :], (B, T, 2048))
    xseq = jnp.concatenate([feats_exp, emb], axis=2)

    def lstm_layer(xs, wih, whh, b):
        Hn = whh.shape[0]
        gx = jnp.einsum("btd,dg->btg", xs, wih, precision=lax.Precision.HIGHEST) + b

        def step(carry, g_t):
            h, c = carry
            gates = g_t + jnp.dot(h, whh, precision=lax.Precision.HIGHEST)
            i = jax.nn.sigmoid(gates[:, :Hn])
            f = jax.nn.sigmoid(gates[:, Hn:2 * Hn])
            g = jnp.tanh(gates[:, 2 * Hn:3 * Hn])
            o = jax.nn.sigmoid(gates[:, 3 * Hn:])
            c = f * c + i * g
            h = o * jnp.tanh(c)
            return (h, c), h

        init = (jnp.zeros((xs.shape[0], Hn), jnp.float32),
                jnp.zeros((xs.shape[0], Hn), jnp.float32))
        _, hs = lax.scan(step, init, jnp.swapaxes(gx, 0, 1))
        return jnp.swapaxes(hs, 0, 1)

    h = lstm_layer(xseq, params["w_ih0"], params["w_hh0"], params["b0"])
    h = lstm_layer(h, params["w_ih1"], params["w_hh1"], params["b1"])
    return jnp.einsum("bth,hv->btv", h, params["w_lin"],
                      precision=lax.Precision.HIGHEST) + params["b_lin"]


if __name__ == "__main__":
    B, C, Hi, Wi = 2, 3, 16, 16
    vocab_size, embed_size, hidden_size, num_layers = 32, 32, 32, 2
    T = 8
    F = 2048                      # hard-coded by `.view(B, -1, 2048)` in the module
    D0 = F + embed_size

    key = jax.random.PRNGKey(0)
    ks = jax.random.split(key, 16)
    params = {
        "w_conv": 0.2 * jax.random.normal(ks[0], (F, C), jnp.float32),
        "b_conv": 0.1 * jax.random.normal(ks[1], (F, 1), jnp.float32),
        "embed": 0.5 * jax.random.normal(ks[2], (vocab_size, embed_size), jnp.float32),
        "w_ih0": 0.05 * jax.random.normal(ks[3], (D0, 4 * hidden_size), jnp.float32),
        "w_hh0": 0.05 * jax.random.normal(ks[4], (hidden_size, 4 * hidden_size), jnp.float32),
        "b0":    0.05 * jax.random.normal(ks[5], (1, 4 * hidden_size), jnp.float32),
        "w_ih1": 0.05 * jax.random.normal(ks[6], (hidden_size, 4 * hidden_size), jnp.float32),
        "w_hh1": 0.05 * jax.random.normal(ks[7], (hidden_size, 4 * hidden_size), jnp.float32),
        "b1":    0.05 * jax.random.normal(ks[8], (1, 4 * hidden_size), jnp.float32),
        "w_lin": 0.1 * jax.random.normal(ks[9], (hidden_size, vocab_size), jnp.float32),
        "b_lin": 0.1 * jax.random.normal(ks[10], (1, vocab_size), jnp.float32),
    }
    images = jax.random.normal(ks[11], (B, C, Hi, Wi), jnp.float32)
    captions = jax.random.randint(ks[12], (B, T), 0, vocab_size, dtype=jnp.int32)

    # one-time parameter folds (hoisted out of the per-call forward path).
    prepped = jax.tree_util.tree_map(jax.block_until_ready,
                                     prepare_params(params, images.shape))

    out = caption_generator_forward(images, captions, prepped, vocab_size=vocab_size)
    out = jax.block_until_ready(out)
    assert out.shape == (B, T, vocab_size), out.shape

    ref = reference_forward(images, captions, params)
    max_err = float(jnp.max(jnp.abs(out - ref)))
    assert jnp.allclose(out, ref, atol=1e-2, rtol=1e-2), f"max abs err {max_err}"

    print("KERNEL_OK")
</pallas_src>

<mosaic_0001>
module attributes {stable_mosaic.version = 11 : i64} {
  func.func @caption_kernel(%arg0: i32, %arg1: memref<8x768xbf16, #tpu.memory_space<vmem>>, %arg2: memref<768x128xbf16, #tpu.memory_space<vmem>>, %arg3: memref<1x128xf32, #tpu.memory_space<vmem>>, %arg4: memref<64x1xi32, #tpu.memory_space<vmem>>, %arg5: memref<128x128xbf16, #tpu.memory_space<vmem>>, %arg6: memref<32x128xf32, #tpu.memory_space<vmem>>, %arg7: memref<64x128xf32, #tpu.memory_space<vmem>>, %arg8: memref<1x128xf32, #tpu.memory_space<vmem>>, %arg9: memref<32x128xf32, #tpu.memory_space<vmem>>, %arg10: memref<1x128xf32, #tpu.memory_space<vmem>>, %arg11: memref<64x128xf32, #tpu.memory_space<vmem>>, %arg12: memref<64x128xf32, #tpu.memory_space<vmem>>, %arg13: memref<64x32xf32, #tpu.memory_space<vmem>>) attributes {dimension_semantics = [#tpu.dimension_semantics<parallel>], iteration_bounds = array<i64: 1>, scalar_prefetch = 0 : i64, scratch_operands = 2 : i64, tpu.core_type = #tpu.core_type<tc>, window_params = [{transform_indices = @transform_0, window_bounds = array<i64: 8, 768>}, {pipeline_mode = #tpu.pipeline_mode<synchronous>, transform_indices = @transform_1, window_bounds = array<i64: 768, 128>}, {pipeline_mode = #tpu.pipeline_mode<synchronous>, transform_indices = @transform_2, window_bounds = array<i64: 1, 128>}, {transform_indices = @transform_3, window_bounds = array<i64: 64, 1>}, {pipeline_mode = #tpu.pipeline_mode<synchronous>, transform_indices = @transform_4, window_bounds = array<i64: 128, 128>}, {pipeline_mode = #tpu.pipeline_mode<synchronous>, transform_indices = @transform_5, window_bounds = array<i64: 32, 128>}, {pipeline_mode = #tpu.pipeline_mode<synchronous>, transform_indices = @transform_6, window_bounds = array<i64: 64, 128>}, {pipeline_mode = #tpu.pipeline_mode<synchronous>, transform_indices = @transform_7, window_bounds = array<i64: 1, 128>}, {pipeline_mode = #tpu.pipeline_mode<synchronous>, transform_indices = @transform_8, window_bounds = array<i64: 32, 128>}, {pipeline_mode = #tpu.pipeline_mode<synchronous>, transform_indices = @transform_9, window_bounds = array<i64: 1, 128>}, {transform_indices = @transform_10, window_bounds = array<i64: 64, 128>}]} {
    %c0 = arith.constant 0 : index
    %c0_0 = arith.constant 0 : index
    %0 = vector.load %arg1[%c0, %c0_0] : memref<8x768xbf16, #tpu.memory_space<vmem>>, vector<8x768xbf16>
    %c0_1 = arith.constant 0 : index
    %c0_2 = arith.constant 0 : index
    %1 = vector.load %arg2[%c0_1, %c0_2] : memref<768x128xbf16, #tpu.memory_space<vmem>>, vector<768x128xbf16>
    %cst = arith.constant dense<0.000000e+00> : vector<8x128xf32>
    %2 = tpu.matmul %0, %1, %cst {dimension_numbers = #tpu.dot_dimension_numbers<[1], [0], [0], [1], [0, 0, 1, 1], [], []>} : vector<8x768xbf16>, vector<768x128xbf16>, vector<8x128xf32> -> vector<8x128xf32>
    %c0_3 = arith.constant 0 : index
    %c0_4 = arith.constant 0 : index
    %3 = vector.load %arg3[%c0_3, %c0_4] : memref<1x128xf32, #tpu.memory_space<vmem>>, vector<1x128xf32>
    %4 = vector.broadcast %3 : vector<1x128xf32> to vector<8x128xf32>
    %5 = arith.addf %2, %4 : vector<8x128xf32>
    %c0_5 = arith.constant 0 : index
    %c0_6 = arith.constant 0 : index
    %6 = vector.load %arg4[%c0_5, %c0_6] : memref<64x1xi32, #tpu.memory_space<vmem>>, vector<64x1xi32>
    %7 = tpu.iota {dimensions = array<i32: 1>} : vector<64x128xi32>
    %8 = vector.broadcast %6 : vector<64x1xi32> to vector<64x128xi32>
    %9 = arith.cmpi eq, %8, %7 : vector<64x128xi32>
    %10 = arith.extui %9 : vector<64x128xi1> to vector<64x128xi32>
    %11 = arith.sitofp %10 : vector<64x128xi32> to vector<64x128xf32>
    %12 = arith.truncf %11 : vector<64x128xf32> to vector<64x128xbf16>
    %c0_7 = arith.constant 0 : index
    %c0_8 = arith.constant 0 : index
    %13 = vector.load %arg5[%c0_7, %c0_8] : memref<128x128xbf16, #tpu.memory_space<vmem>>, vector<128x128xbf16>
    %cst_9 = arith.constant dense<0.000000e+00> : vector<64x128xf32>
    %14 = tpu.matmul %12, %13, %cst_9 {dimension_numbers = #tpu.dot_dimension_numbers<[1], [0], [0], [1], [0, 0, 1, 1], [], []>} : vector<64x128xbf16>, vector<128x128xbf16>, vector<64x128xf32> -> vector<64x128xf32>
    %15 = tpu.concatenate %5, %5, %5, %5, %5, %5, %5, %5 in 0 : vector<8x128xf32>, vector<8x128xf32>, vector<8x128xf32>, vector<8x128xf32>, vector<8x128xf32>, vector<8x128xf32>, vector<8x128xf32>, vector<8x128xf32> -> vector<64x128xf32>
    %16 = arith.addf %14, %15 : vector<64x128xf32>
    %c0_10 = arith.constant 0 : index
    %c0_11 = arith.constant 0 : index
    %17 = vector.load %arg12[%c0_10, %c0_11] : memref<64x128xf32, #tpu.memory_space<vmem>>, vector<64x128xf32>
    tpu.vector_store %arg12[%c0_10, %c0_11], %16 {strides = array<i32>} : memref<64x128xf32, #tpu.memory_space<vmem>>, vector<64x128xf32>,
    %c0_12 = arith.constant 0 : index
    %c0_13 = arith.constant 0 : index
    %18 = vector.load %arg6[%c0_12, %c0_13] : memref<32x128xf32, #tpu.memory_space<vmem>>, vector<32x128xf32>
    %c0_14 = arith.constant 0 : index
    %c0_15 = arith.constant 0 : index
    %19 = vector.load %arg7[%c0_14, %c0_15] : memref<64x128xf32, #tpu.memory_space<vmem>>, vector<64x128xf32>
    %c0_16 = arith.constant 0 : index
    %c0_17 = arith.constant 0 : index
    %20 = vector.load %arg8[%c0_16, %c0_17] : memref<1x128xf32, #tpu.memory_space<vmem>>, vector<1x128xf32>
    %cst_18 = arith.constant 0.000000e+00 : f32
    %21 = vector.broadcast %cst_18 : f32 to vector<8x32xf32>
    %c0_i32 = arith.constant 0 : i32
    %c8_i32 = arith.constant 8 : i32
    %22 = arith.muli %c0_i32, %c8_i32 : i32
    %23 = tpu.assume_multiple %22, 8 : i32
    %24 = arith.index_cast %23 : i32 to index
    %c0_19 = arith.constant 0 : index
    %25 = vector.load %arg12[%24, %c0_19] : memref<64x128xf32, #tpu.memory_space<vmem>>, vector<8x128xf32>
    %cst_20 = arith.constant dense<0.000000e+00> : vector<8x128xf32>
    %26 = tpu.matmul %21, %18, %cst_20 {dimension_numbers = #tpu.dot_dimension_numbers<[1], [0], [0], [1], [0, 0, 1, 1], [], []>} : vector<8x32xf32>, vector<32x128xf32>, vector<8x128xf32> -> vector<8x128xf32>
    %27 = arith.addf %25, %26 : vector<8x128xf32>
    %28 = vector.extract_strided_slice %27 {offsets = [0, 0], sizes = [8, 32], strides = [1, 1]} : vector<8x128xf32> to vector<8x32xf32>
    %29 = arith.negf %28 : vector<8x32xf32>
    %30 = math.exp %29 : vector<8x32xf32>
    %cst_21 = arith.constant 1.000000e+00 : f32
    %31 = vector.broadcast %cst_21 : f32 to vector<8x32xf32>
    %32 = arith.addf %31, %30 : vector<8x32xf32>
    %33 = arith.divf %31, %32 : vector<8x32xf32>
    %34 = vector.extract_strided_slice %27 {offsets = [0, 32], sizes = [8, 32], strides = [1, 1]} : vector<8x128xf32> to vector<8x32xf32>
    %35 = arith.negf %34 : vector<8x32xf32>
    %36 = math.exp %35 : vector<8x32xf32>
    %cst_22 = arith.constant 1.000000e+00 : f32
    %37 = vector.broadcast %cst_22 : f32 to vector<8x32xf32>
    %38 = arith.addf %37, %36 : vector<8x32xf32>
    %39 = arith.divf %37, %38 : vector<8x32xf32>
    %40 = vector.extract_strided_slice %27 {offsets = [0, 64], sizes = [8, 32], strides = [1, 1]} : vector<8x128xf32> to vector<8x32xf32>
    %41 = math.tanh %40 : vector<8x32xf32>
    %42 = vector.extract_strided_slice %27 {offsets = [0, 96], sizes = [8, 32], strides = [1, 1]} : vector<8x128xf32> to vector<8x32xf32>
    %43 = arith.negf %42 : vector<8x32xf32>
    %44 = math.exp %43 : vector<8x32xf32>
    %cst_23 = arith.constant 1.000000e+00 : f32
    %45 = vector.broadcast %cst_23 : f32 to vector<8x32xf32>
    %46 = arith.addf %45, %44 : vector<8x32xf32>
    %47 = arith.divf %45, %46 : vector<8x32xf32>
    %48 = arith.mulf %39, %21 : vector<8x32xf32>
    %49 = arith.mulf %33, %41 : vector<8x32xf32>
    %50 = arith.addf %48, %49 : vector<8x32xf32>
    %51 = math.tanh %50 : vector<8x32xf32>
    %52 = arith.mulf %47, %51 : vector<8x32xf32>
    %53 = tpu.concatenate %52, %21 in 1 : vector<8x32xf32>, vector<8x32xf32> -> vector<8x64xf32>
    %cst_24 = arith.constant dense<0.000000e+00> : vector<8x128xf32>
    %54 = tpu.matmul %53, %19, %cst_24 {dimension_numbers = #tpu.dot_dimension_numbers<[1], [0], [0], [1], [0, 0, 1, 1], [], []>} : vector<8x64xf32>, vector<64x128xf32>, vector<8x128xf32> -> vector<8x128xf32>
    %55 = vector.broadcast %20 : vector<1x128xf32> to vector<8x128xf32>
    %56 = arith.addf %54, %55 : vector<8x128xf32>
    %57 = vector.extract_strided_slice %56 {offsets = [0, 0], sizes = [8, 32], strides = [1, 1]} : vector<8x128xf32> to vector<8x32xf32>
    %58 = arith.negf %57 : vector<8x32xf32>
    %59 = math.exp %58 : vector<8x32xf32>
    %cst_25 = arith.constant 1.000000e+00 : f32
    %60 = vector.broadcast %cst_25 : f32 to vector<8x32xf32>
    %61 = arith.addf %60, %59 : vector<8x32xf32>
    %62 = arith.divf %60, %61 : vector<8x32xf32>
    %63 = vector.extract_strided_slice %56 {offsets = [0, 32], sizes = [8, 32], strides = [1, 1]} : vector<8x128xf32> to vector<8x32xf32>
    %64 = arith.negf %63 : vector<8x32xf32>
    %65 = math.exp %64 : vector<8x32xf32>
    %cst_26 = arith.constant 1.000000e+00 : f32
    %66 = vector.broadcast %cst_26 : f32 to vector<8x32xf32>
    %67 = arith.addf %66, %65 : vector<8x32xf32>
    %68 = arith.divf %66, %67 : vector<8x32xf32>
    %69 = vector.extract_strided_slice %56 {offsets = [0, 64], sizes = [8, 32], strides = [1, 1]} : vector<8x128xf32> to vector<8x32xf32>
    %70 = math.tanh %69 : vector<8x32xf32>
    %71 = vector.extract_strided_slice %56 {offsets = [0, 96], sizes = [8, 32], strides = [1, 1]} : vector<8x128xf32> to vector<8x32xf32>
    %72 = arith.negf %71 : vector<8x32xf32>
    %73 = math.exp %72 : vector<8x32xf32>
    %cst_27 = arith.constant 1.000000e+00 : f32
    %74 = vector.broadcast %cst_27 : f32 to vector<8x32xf32>
    %75 = arith.addf %74, %73 : vector<8x32xf32>
    %76 = arith.divf %74, %75 : vector<8x32xf32>
    %77 = arith.mulf %68, %21 : vector<8x32xf32>
    %78 = arith.mulf %62, %70 : vector<8x32xf32>
    %79 = arith.addf %77, %78 : vector<8x32xf32>
    %80 = math.tanh %79 : vector<8x32xf32>
    %81 = arith.mulf %76, %80 : vector<8x32xf32>
    %82 = arith.index_cast %23 : i32 to index
    %c0_28 = arith.constant 0 : index
    %83 = vector.load %arg13[%82, %c0_28] : memref<64x32xf32, #tpu.memory_space<vmem>>, vector<8x32xf32>
    tpu.vector_store %arg13[%82, %c0_28], %81 {strides = array<i32>} : memref<64x32xf32, #tpu.memory_space<vmem>>, vector<8x32xf32>,
    %c1_i32 = arith.constant 1 : i32
    %c8_i32_29 = arith.constant 8 : i32
    %84 = arith.muli %c1_i32, %c8_i32_29 : i32
    %85 = tpu.assume_multiple %84, 8 : i32
    %86 = arith.index_cast %85 : i32 to index
    %c0_30 = arith.constant 0 : index
    %87 = vector.load %arg12[%86, %c0_30] : memref<64x128xf32, #tpu.memory_space<vmem>>, vector<8x128xf32>
    %cst_31 = arith.constant dense<0.000000e+00> : vector<8x128xf32>
    %88 = tpu.matmul %52, %18, %cst_31 {dimension_numbers = #tpu.dot_dimension_numbers<[1], [0], [0], [1], [0, 0, 1, 1], [], []>} : vector<8x32xf32>, vector<32x128xf32>, vector<8x128xf32> -> vector<8x128xf32>
    %89 = arith.addf %87, %88 : vector<8x128xf32>
    %90 = vector.extract_strided_slice %89 {offsets = [0, 0], sizes = [8, 32], strides = [1, 1]} : vector<8x128xf32> to vector<8x32xf32>
    %91 = arith.negf %90 : vector<8x32xf32>
    %92 = math.exp %91 : vector<8x32xf32>
    %cst_32 = arith.constant 1.000000e+00 : f32
    %93 = vector.broadcast %cst_32 : f32 to vector<8x32xf32>
    %94 = arith.addf %93, %92 : vector<8x32xf32>
    %95 = arith.divf %93, %94 : vector<8x32xf32>
    %96 = vector.extract_strided_slice %89 {offsets = [0, 32], sizes = [8, 32], strides = [1, 1]} : vector<8x128xf32> to vector<8x32xf32>
    %97 = arith.negf %96 : vector<8x32xf32>
    %98 = math.exp %97 : vector<8x32xf32>
    %cst_33 = arith.constant 1.000000e+00 : f32
    %99 = vector.broadcast %cst_33 : f32 to vector<8x32xf32>
    %100 = arith.addf %99, %98 : vector<8x32xf32>
    %101 = arith.divf %99, %100 : vector<8x32xf32>
    %102 = vector.extract_strided_slice %89 {offsets = [0, 64], sizes = [8, 32], strides = [1, 1]} : vector<8x128xf32> to vector<8x32xf32>
    %103 = math.tanh %102 : vector<8x32xf32>
    %104 = vector.extract_strided_slice %89 {offsets = [0, 96], sizes = [8, 32], strides = [1, 1]} : vector<8x128xf32> to vector<8x32xf32>
    %105 = arith.negf %104 : vector<8x32xf32>
    %106 = math.exp %105 : vector<8x32xf32>
    %cst_34 = arith.constant 1.000000e+00 : f32
    %107 = vector.broadcast %cst_34 : f32 to vector<8x32xf32>
    %108 = arith.addf %107, %106 : vector<8x32xf32>
    %109 = arith.divf %107, %108 : vector<8x32xf32>
    %110 = arith.mulf %101, %50 : vector<8x32xf32>
    %111 = arith.mulf %95, %103 : vector<8x32xf32>
    %112 = arith.addf %110, %111 : vector<8x32xf32>
    %113 = math.tanh %112 : vector<8x32xf32>
    %114 = arith.mulf %109, %113 : vector<8x32xf32>
    %115 = tpu.concatenate %114, %81 in 1 : vector<8x32xf32>, vector<8x32xf32> -> vector<8x64xf32>
    %cst_35 = arith.constant dense<0.000000e+00> : vector<8x128xf32>
    %116 = tpu.matmul %115, %19, %cst_35 {dimension_numbers = #tpu.dot_dimension_numbers<[1], [0], [0], [1], [0, 0, 1, 1], [], []>} : vector<8x64xf32>, vector<64x128xf32>, vector<8x128xf32> -> vector<8x128xf32>
    %117 = vector.broadcast %20 : vector<1x128xf32> to vector<8x128xf32>
    %118 = arith.addf %116, %117 : vector<8x128xf32>
    %119 = vector.extract_strided_slice %118 {offsets = [0, 0], sizes = [8, 32], strides = [1, 1]} : vector<8x128xf32> to vector<8x32xf32>
    %120 = arith.negf %119 : vector<8x32xf32>
    %121 = math.exp %120 : vector<8x32xf32>
    %cst_36 = arith.constant 1.000000e+00 : f32
    %122 = vector.broadcast %cst_36 : f32 to vector<8x32xf32>
    %123 = arith.addf %122, %121 : vector<8x32xf32>
    %124 = arith.divf %122, %123 : vector<8x32xf32>
    %125 = vector.extract_strided_slice %118 {offsets = [0, 32], sizes = [8, 32], strides = [1, 1]} : vector<8x128xf32> to vector<8x32xf32>
    %126 = arith.negf %125 : vector<8x32xf32>
    %127 = math.exp %126 : vector<8x32xf32>
    %cst_37 = arith.constant 1.000000e+00 : f32
    %128 = vector.broadcast %cst_37 : f32 to vector<8x32xf32>
    %129 = arith.addf %128, %127 : vector<8x32xf32>
    %130 = arith.divf %128, %129 : vector<8x32xf32>
    %131 = vector.extract_strided_slice %118 {offsets = [0, 64], sizes = [8, 32], strides = [1, 1]} : vector<8x128xf32> to vector<8x32xf32>
    %132 = math.tanh %131 : vector<8x32xf32>
    %133 = vector.extract_strided_slice %118 {offsets = [0, 96], sizes = [8, 32], strides = [1, 1]} : vector<8x128xf32> to vector<8x32xf32>
    %134 = arith.negf %133 : vector<8x32xf32>
    %135 = math.exp %134 : vector<8x32xf32>
    %cst_38 = arith.constant 1.000000e+00 : f32
    %136 = vector.broadcast %cst_38 : f32 to vector<8x32xf32>
    %137 = arith.addf %136, %135 : vector<8x32xf32>
    %138 = arith.divf %136, %137 : vector<8x32xf32>
    %139 = arith.mulf %130, %79 : vector<8x32xf32>
    %140 = arith.mulf %124, %132 : vector<8x32xf32>
    %141 = arith.addf %139, %140 : vector<8x32xf32>
    %142 = math.tanh %141 : vector<8x32xf32>
    %143 = arith.mulf %138, %142 : vector<8x32xf32>
    %144 = arith.index_cast %85 : i32 to index
    %c0_39 = arith.constant 0 : index
    %145 = vector.load %arg13[%144, %c0_39] : memref<64x32xf32, #tpu.memory_space<vmem>>, vector<8x32xf32>
    tpu.vector_store %arg13[%144, %c0_39], %143 {strides = array<i32>} : memref<64x32xf32, #tpu.memory_space<vmem>>, vector<8x32xf32>,
    %c2_i32 = arith.constant 2 : i32
    %c8_i32_40 = arith.constant 8 : i32
    %146 = arith.muli %c2_i32, %c8_i32_40 : i32
    %147 = tpu.assume_multiple %146, 8 : i32
    %148 = arith.index_cast %147 : i32 to index
    %c0_41 = arith.constant 0 : index
    %149 = vector.load %arg12[%148, %c0_41] : memref<64x128xf32, #tpu.memory_space<vmem>>, vector<8x128xf32>
    %cst_42 = arith.constant dense<0.000000e+00> : vector<8x128xf32>
    %150 = tpu.matmul %114, %18, %cst_42 {dimension_numbers = #tpu.dot_dimension_numbers<[1], [0], [0], [1], [0, 0, 1, 1], [], []>} : vector<8x32xf32>, vector<32x128xf32>, vector<8x128xf32> -> vector<8x128xf32>
    %151 = arith.addf %149, %150 : vector<8x128xf32>
    %152 = vector.extract_strided_slice %151 {offsets = [0, 0], sizes = [8, 32], strides = [1, 1]} : vector<8x128xf32> to vector<8x32xf32>
    %153 = arith.negf %152 : vector<8x32xf32>
    %154 = math.exp %153 : vector<8x32xf32>
    %cst_43 = arith.constant 1.000000e+00 : f32
    %155 = vector.broadcast %cst_43 : f32 to vector<8x32xf32>
    %156 = arith.addf %155, %154 : vector<8x32xf32>
    %157 = arith.divf %155, %156 : vector<8x32xf32>
    %158 = vector.extract_strided_slice %151 {offsets = [0, 32], sizes = [8, 32], strides = [1, 1]} : vector<8x128xf32> to vector<8x32xf32>
    %159 = arith.negf %158 : vector<8x32xf32>
    %160 = math.exp %159 : vector<8x32xf32>
    %cst_44 = arith.constant 1.000000e+00 : f32
    %161 = vector.broadcast %cst_44 : f32 to vector<8x32xf32>
    %162 = arith.addf %161, %160 : vector<8x32xf32>
    %163 = arith.divf %161, %162 : vector<8x32xf32>
    %164 = vector.extract_strided_slice %151 {offsets = [0, 64], sizes = [8, 32], strides = [1, 1]} : vector<8x128xf32> to vector<8x32xf32>
    %165 = math.tanh %164 : vector<8x32xf32>
    %166 = vector.extract_strided_slice %151 {offsets = [0, 96], sizes = [8, 32], strides = [1, 1]} : vector<8x128xf32> to vector<8x32xf32>
    %167 = arith.negf %166 : vector<8x32xf32>
    %168 = math.exp %167 : vector<8x32xf32>
    %cst_45 = arith.constant 1.000000e+00 : f32
    %169 = vector.broadcast %cst_45 : f32 to vector<8x32xf32>
    %170 = arith.addf %169, %168 : vector<8x32xf32>
    %171 = arith.divf %169, %170 : vector<8x32xf32>
    %172 = arith.mulf %163, %112 : vector<8x32xf32>
    %173 = arith.mulf %157, %165 : vector<8x32xf32>
    %174 = arith.addf %172, %173 : vector<8x32xf32>
    %175 = math.tanh %174 : vector<8x32xf32>
    %176 = arith.mulf %171, %175 : vector<8x32xf32>
    %177 = tpu.concatenate %176, %143 in 1 : vector<8x32xf32>, vector<8x32xf32> -> vector<8x64xf32>
    %cst_46 = arith.constant dense<0.000000e+00> : vector<8x128xf32>
    %178 = tpu.matmul %177, %19, %cst_46 {dimension_numbers = #tpu.dot_dimension_numbers<[1], [0], [0], [1], [0, 0, 1, 1], [], []>} : vector<8x64xf32>, vector<64x128xf32>, vector<8x128xf32> -> vector<8x128xf32>
    %179 = vector.broadcast %20 : vector<1x128xf32> to vector<8x128xf32>
    %180 = arith.addf %178, %179 : vector<8x128xf32>
    %181 = vector.extract_strided_slice %180 {offsets = [0, 0], sizes = [8, 32], strides = [1, 1]} : vector<8x128xf32> to vector<8x32xf32>
    %182 = arith.negf %181 : vector<8x32xf32>
    %183 = math.exp %182 : vector<8x32xf32>
    %cst_47 = arith.constant 1.000000e+00 : f32
    %184 = vector.broadcast %cst_47 : f32 to vector<8x32xf32>
    %185 = arith.addf %184, %183 : vector<8x32xf32>
    %186 = arith.divf %184, %185 : vector<8x32xf32>
    %187 = vector.extract_strided_slice %180 {offsets = [0, 32], sizes = [8, 32], strides = [1, 1]} : vector<8x128xf32> to vector<8x32xf32>
    %188 = arith.negf %187 : vector<8x32xf32>
    %189 = math.exp %188 : vector<8x32xf32>
    %cst_48 = arith.constant 1.000000e+00 : f32
    %190 = vector.broadcast %cst_48 : f32 to vector<8x32xf32>
    %191 = arith.addf %190, %189 : vector<8x32xf32>
    %192 = arith.divf %190, %191 : vector<8x32xf32>
    %193 = vector.extract_strided_slice %180 {offsets = [0, 64], sizes = [8, 32], strides = [1, 1]} : vector<8x128xf32> to vector<8x32xf32>
    %194 = math.tanh %193 : vector<8x32xf32>
    %195 = vector.extract_strided_slice %180 {offsets = [0, 96], sizes = [8, 32], strides = [1, 1]} : vector<8x128xf32> to vector<8x32xf32>
    %196 = arith.negf %195 : vector<8x32xf32>
    %197 = math.exp %196 : vector<8x32xf32>
    %cst_49 = arith.constant 1.000000e+00 : f32
    %198 = vector.broadcast %cst_49 : f32 to vector<8x32xf32>
    %199 = arith.addf %198, %197 : vector<8x32xf32>
    %200 = arith.divf %198, %199 : vector<8x32xf32>
    %201 = arith.mulf %192, %141 : vector<8x32xf32>
    %202 = arith.mulf %186, %194 : vector<8x32xf32>
    %203 = arith.addf %201, %202 : vector<8x32xf32>
    %204 = math.tanh %203 : vector<8x32xf32>
    %205 = arith.mulf %200, %204 : vector<8x32xf32>
    %206 = arith.index_cast %147 : i32 to index
    %c0_50 = arith.constant 0 : index
    %207 = vector.load %arg13[%206, %c0_50] : memref<64x32xf32, #tpu.memory_space<vmem>>, vector<8x32xf32>
    tpu.vector_store %arg13[%206, %c0_50], %205 {strides = array<i32>} : memref<64x32xf32, #tpu.memory_space<vmem>>, vector<8x32xf32>,
    %c3_i32 = arith.constant 3 : i32
    %c8_i32_51 = arith.constant 8 : i32
    %208 = arith.muli %c3_i32, %c8_i32_51 : i32
    %209 = tpu.assume_multiple %208, 8 : i32
    %210 = arith.index_cast %209 : i32 to index
    %c0_52 = arith.constant 0 : index
    %211 = vector.load %arg12[%210, %c0_52] : memref<64x128xf32, #tpu.memory_space<vmem>>, vector<8x128xf32>
    %cst_53 = arith.constant dense<0.000000e+00> : vector<8x128xf32>
    %212 = tpu.matmul %176, %18, %cst_53 {dimension_numbers = #tpu.dot_dimension_numbers<[1], [0], [0], [1], [0, 0, 1, 1], [], []>} : vector<8x32xf32>, vector<32x128xf32>, vector<8x128xf32> -> vector<8x128xf32>
    %213 = arith.addf %211, %212 : vector<8x128xf32>
    %214 = vector.extract_strided_slice %213 {offsets = [0, 0], sizes = [8, 32], strides = [1, 1]} : vector<8x128xf32> to vector<8x32xf32>
    %215 = arith.negf %214 : vector<8x32xf32>
    %216 = math.exp %215 : vector<8x32xf32>
    %cst_54 = arith.constant 1.000000e+00 : f32
    %217 = vector.broadcast %cst_54 : f32 to vector<8x32xf32>
    %218 = arith.addf %217, %216 : vector<8x32xf32>
    %219 = arith.divf %217, %218 : vector<8x32xf32>
    %220 = vector.extract_strided_slice %213 {offsets = [0, 32], sizes = [8, 32], strides = [1, 1]} : vector<8x128xf32> to vector<8x32xf32>
    %221 = arith.negf %220 : vector<8x32xf32>
    %222 = math.exp %221 : vector<8x32xf32>
    %cst_55 = arith.constant 1.000000e+00 : f32
    %223 = vector.broadcast %cst_55 : f32 to vector<8x32xf32>
    %224 = arith.addf %223, %222 : vector<8x32xf32>
    %225 = arith.divf %223, %224 : vector<8x32xf32>
    %226 = vector.extract_strided_slice %213 {offsets = [0, 64], sizes = [8, 32], strides = [1, 1]} : vector<8x128xf32> to vector<8x32xf32>
    %227 = math.tanh %226 : vector<8x32xf32>
    %228 = vector.extract_strided_slice %213 {offsets = [0, 96], sizes = [8, 32], strides = [1, 1]} : vector<8x128xf32> to vector<8x32xf32>
    %229 = arith.negf %228 : vector<8x32xf32>
    %230 = math.exp %229 : vector<8x32xf32>
    %cst_56 = arith.constant 1.000000e+00 : f32
    %231 = vector.broadcast %cst_56 : f32 to vector<8x32xf32>
    %232 = arith.addf %231, %230 : vector<8x32xf32>
    %233 = arith.divf %231, %232 : vector<8x32xf32>
    %234 = arith.mulf %225, %174 : vector<8x32xf32>
    %235 = arith.mulf %219, %227 : vector<8x32xf32>
    %236 = arith.addf %234, %235 : vector<8x32xf32>
    %237 = math.tanh %236 : vector<8x32xf32>
    %238 = arith.mulf %233, %237 : vector<8x32xf32>
    %239 = tpu.concatenate %238, %205 in 1 : vector<8x32xf32>, vector<8x32xf32> -> vector<8x64xf32>
    %cst_57 = arith.constant dense<0.000000e+00> : vector<8x128xf32>
    %240 = tpu.matmul %239, %19, %cst_57 {dimension_numbers = #tpu.dot_dimension_numbers<[1], [0], [0], [1], [0, 0, 1, 1], [], []>} : vector<8x64xf32>, vector<64x128xf32>, vector<8x128xf32> -> vector<8x128xf32>
    %241 = vector.broadcast %20 : vector<1x128xf32> to vector<8x128xf32>
    %242 = arith.addf %240, %241 : vector<8x128xf32>
    %243 = vector.extract_strided_slice %242 {offsets = [0, 0], sizes = [8, 32], strides = [1, 1]} : vector<8x128xf32> to vector<8x32xf32>
    %244 = arith.negf %243 : vector<8x32xf32>
    %245 = math.exp %244 : vector<8x32xf32>
    %cst_58 = arith.constant 1.000000e+00 : f32
    %246 = vector.broadcast %cst_58 : f32 to vector<8x32xf32>
    %247 = arith.addf %246, %245 : vector<8x32xf32>
    %248 = arith.divf %246, %247 : vector<8x32xf32>
    %249 = vector.extract_strided_slice %242 {offsets = [0, 32], sizes = [8, 32], strides = [1, 1]} : vector<8x128xf32> to vector<8x32xf32>
    %250 = arith.negf %249 : vector<8x32xf32>
    %251 = math.exp %250 : vector<8x32xf32>
    %cst_59 = arith.constant 1.000000e+00 : f32
    %252 = vector.broadcast %cst_59 : f32 to vector<8x32xf32>
    %253 = arith.addf %252, %251 : vector<8x32xf32>
    %254 = arith.divf %252, %253 : vector<8x32xf32>
    %255 = vector.extract_strided_slice %242 {offsets = [0, 64], sizes = [8, 32], strides = [1, 1]} : vector<8x128xf32> to vector<8x32xf32>
    %256 = math.tanh %255 : vector<8x32xf32>
    %257 = vector.extract_strided_slice %242 {offsets = [0, 96], sizes = [8, 32], strides = [1, 1]} : vector<8x128xf32> to vector<8x32xf32>
    %258 = arith.negf %257 : vector<8x32xf32>
    %259 = math.exp %258 : vector<8x32xf32>
    %cst_60 = arith.constant 1.000000e+00 : f32
    %260 = vector.broadcast %cst_60 : f32 to vector<8x32xf32>
    %261 = arith.addf %260, %259 : vector<8x32xf32>
    %262 = arith.divf %260, %261 : vector<8x32xf32>
    %263 = arith.mulf %254, %203 : vector<8x32xf32>
    %264 = arith.mulf %248, %256 : vector<8x32xf32>
    %265 = arith.addf %263, %264 : vector<8x32xf32>
    %266 = math.tanh %265 : vector<8x32xf32>
    %267 = arith.mulf %262, %266 : vector<8x32xf32>
    %268 = arith.index_cast %209 : i32 to index
    %c0_61 = arith.constant 0 : index
    %269 = vector.load %arg13[%268, %c0_61] : memref<64x32xf32, #tpu.memory_space<vmem>>, vector<8x32xf32>
    tpu.vector_store %arg13[%268, %c0_61], %267 {strides = array<i32>} : memref<64x32xf32, #tpu.memory_space<vmem>>, vector<8x32xf32>,
    %c4_i32 = arith.constant 4 : i32
    %c8_i32_62 = arith.constant 8 : i32
    %270 = arith.muli %c4_i32, %c8_i32_62 : i32
    %271 = tpu.assume_multiple %270, 8 : i32
    %272 = arith.index_cast %271 : i32 to index
    %c0_63 = arith.constant 0 : index
    %273 = vector.load %arg12[%272, %c0_63] : memref<64x128xf32, #tpu.memory_space<vmem>>, vector<8x128xf32>
    %cst_64 = arith.constant dense<0.000000e+00> : vector<8x128xf32>
    %274 = tpu.matmul %238, %18, %cst_64 {dimension_numbers = #tpu.dot_dimension_numbers<[1], [0], [0], [1], [0, 0, 1, 1], [], []>} : vector<8x32xf32>, vector<32x128xf32>, vector<8x128xf32> -> vector<8x128xf32>
    %275 = arith.addf %273, %274 : vector<8x128xf32>
    %276 = vector.extract_strided_slice %275 {offsets = [0, 0], sizes = [8, 32], strides = [1, 1]} : vector<8x128xf32> to vector<8x32xf32>
    %277 = arith.negf %276 : vector<8x32xf32>
    %278 = math.exp %277 : vector<8x32xf32>
    %cst_65 = arith.constant 1.000000e+00 : f32
    %279 = vector.broadcast %cst_65 : f32 to vector<8x32xf32>
    %280 = arith.addf %279, %278 : vector<8x32xf32>
    %281 = arith.divf %279, %280 : vector<8x32xf32>
    %282 = vector.extract_strided_slice %275 {offsets = [0, 32], sizes = [8, 32], strides = [1, 1]} : vector<8x128xf32> to vector<8x32xf32>
    %283 = arith.negf %282 : vector<8x32xf32>
    %284 = math.exp %283 : vector<8x32xf32>
    %cst_66 = arith.constant 1.000000e+00 : f32
    %285 = vector.broadcast %cst_66 : f32 to vector<8x32xf32>
    %286 = arith.addf %285, %284 : vector<8x32xf32>
    %287 = arith.divf %285, %286 : vector<8x32xf32>
    %288 = vector.extract_strided_slice %275 {offsets = [0, 64], sizes = [8, 32], strides = [1, 1]} : vector<8x128xf32> to vector<8x32xf32>
    %289 = math.tanh %288 : vector<8x32xf32>
    %290 = vector.extract_strided_slice %275 {offsets = [0, 96], sizes = [8, 32], strides = [1, 1]} : vector<8x128xf32> to vector<8x32xf32>
    %291 = arith.negf %290 : vector<8x32xf32>
    %292 = math.exp %291 : vector<8x32xf32>
    %cst_67 = arith.constant 1.000000e+00 : f32
    %293 = vector.broadcast %cst_67 : f32 to vector<8x32xf32>
    %294 = arith.addf %293, %292 : vector<8x32xf32>
    %295 = arith.divf %293, %294 : vector<8x32xf32>
    %296 = arith.mulf %287, %236 : vector<8x32xf32>
    %297 = arith.mulf %281, %289 : vector<8x32xf32>
    %298 = arith.addf %296, %297 : vector<8x32xf32>
    %299 = math.tanh %298 : vector<8x32xf32>
    %300 = arith.mulf %295, %299 : vector<8x32xf32>
    %301 = tpu.concatenate %300, %267 in 1 : vector<8x32xf32>, vector<8x32xf32> -> vector<8x64xf32>
    %cst_68 = arith.constant dense<0.000000e+00> : vector<8x128xf32>
    %302 = tpu.matmul %301, %19, %cst_68 {dimension_numbers = #tpu.dot_dimension_numbers<[1], [0], [0], [1], [0, 0, 1, 1], [], []>} : vector<8x64xf32>, vector<64x128xf32>, vector<8x128xf32> -> vector<8x128xf32>
    %303 = vector.broadcast %20 : vector<1x128xf32> to vector<8x128xf32>
    %304 = arith.addf %302, %303 : vector<8x128xf32>
    %305 = vector.extract_strided_slice %304 {offsets = [0, 0], sizes = [8, 32], strides = [1, 1]} : vector<8x128xf32> to vector<8x32xf32>
    %306 = arith.negf %305 : vector<8x32xf32>
    %307 = math.exp %306 : vector<8x32xf32>
    %cst_69 = arith.constant 1.000000e+00 : f32
    %308 = vector.broadcast %cst_69 : f32 to vector<8x32xf32>
    %309 = arith.addf %308, %307 : vector<8x32xf32>
    %310 = arith.divf %308, %309 : vector<8x32xf32>
    %311 = vector.extract_strided_slice %304 {offsets = [0, 32], sizes = [8, 32], strides = [1, 1]} : vector<8x128xf32> to vector<8x32xf32>
    %312 = arith.negf %311 : vector<8x32xf32>
    %313 = math.exp %312 : vector<8x32xf32>
    %cst_70 = arith.constant 1.000000e+00 : f32
    %314 = vector.broadcast %cst_70 : f32 to vector<8x32xf32>
    %315 = arith.addf %314, %313 : vector<8x32xf32>
    %316 = arith.divf %314, %315 : vector<8x32xf32>
    %317 = vector.extract_strided_slice %304 {offsets = [0, 64], sizes = [8, 32], strides = [1, 1]} : vector<8x128xf32> to vector<8x32xf32>
    %318 = math.tanh %317 : vector<8x32xf32>
    %319 = vector.extract_strided_slice %304 {offsets = [0, 96], sizes = [8, 32], strides = [1, 1]} : vector<8x128xf32> to vector<8x32xf32>
    %320 = arith.negf %319 : vector<8x32xf32>
    %321 = math.exp %320 : vector<8x32xf32>
    %cst_71 = arith.constant 1.000000e+00 : f32
    %322 = vector.broadcast %cst_71 : f32 to vector<8x32xf32>
    %323 = arith.addf %322, %321 : vector<8x32xf32>
    %324 = arith.divf %322, %323 : vector<8x32xf32>
    %325 = arith.mulf %316, %265 : vector<8x32xf32>
    %326 = arith.mulf %310, %318 : vector<8x32xf32>
    %327 = arith.addf %325, %326 : vector<8x32xf32>
    %328 = math.tanh %327 : vector<8x32xf32>
    %329 = arith.mulf %324, %328 : vector<8x32xf32>
    %330 = arith.index_cast %271 : i32 to index
    %c0_72 = arith.constant 0 : index
    %331 = vector.load %arg13[%330, %c0_72] : memref<64x32xf32, #tpu.memory_space<vmem>>, vector<8x32xf32>
    tpu.vector_store %arg13[%330, %c0_72], %329 {strides = array<i32>} : memref<64x32xf32, #tpu.memory_space<vmem>>, vector<8x32xf32>,
    %c5_i32 = arith.constant 5 : i32
    %c8_i32_73 = arith.constant 8 : i32
    %332 = arith.muli %c5_i32, %c8_i32_73 : i32
    %333 = tpu.assume_multiple %332, 8 : i32
    %334 = arith.index_cast %333 : i32 to index
    %c0_74 = arith.constant 0 : index
    %335 = vector.load %arg12[%334, %c0_74] : memref<64x128xf32, #tpu.memory_space<vmem>>, vector<8x128xf32>
    %cst_75 = arith.constant dense<0.000000e+00> : vector<8x128xf32>
    %336 = tpu.matmul %300, %18, %cst_75 {dimension_numbers = #tpu.dot_dimension_numbers<[1], [0], [0], [1], [0, 0, 1, 1], [], []>} : vector<8x32xf32>, vector<32x128xf32>, vector<8x128xf32> -> vector<8x128xf32>
    %337 = arith.addf %335, %336 : vector<8x128xf32>
    %338 = vector.extract_strided_slice %337 {offsets = [0, 0], sizes = [8, 32], strides = [1, 1]} : vector<8x128xf32> to vector<8x32xf32>
    %339 = arith.negf %338 : vector<8x32xf32>
    %340 = math.exp %339 : vector<8x32xf32>
    %cst_76 = arith.constant 1.000000e+00 : f32
    %341 = vector.broadcast %cst_76 : f32 to vector<8x32xf32>
    %342 = arith.addf %341, %340 : vector<8x32xf32>
    %343 = arith.divf %341, %342 : vector<8x32xf32>
    %344 = vector.extract_strided_slice %337 {offsets = [0, 32], sizes = [8, 32], strides = [1, 1]} : vector<8x128xf32> to vector<8x32xf32>
    %345 = arith.negf %344 : vector<8x32xf32>
    %346 = math.exp %345 : vector<8x32xf32>
    %cst_77 = arith.constant 1.000000e+00 : f32
    %347 = vector.broadcast %cst_77 : f32 to vector<8x32xf32>
    %348 = arith.addf %347, %346 : vector<8x32xf32>
    %349 = arith.divf %347, %348 : vector<8x32xf32>
    %350 = vector.extract_strided_slice %337 {offsets = [0, 64], sizes = [8, 32], strides = [1, 1]} : vector<8x128xf32> to vector<8x32xf32>
    %351 = math.tanh %350 : vector<8x32xf32>
    %352 = vector.extract_strided_slice %337 {offsets = [0, 96], sizes = [8, 32], strides = [1, 1]} : vector<8x128xf32> to vector<8x32xf32>
    %353 = arith.negf %352 : vector<8x32xf32>
    %354 = math.exp %353 : vector<8x32xf32>
    %cst_78 = arith.constant 1.000000e+00 : f32
    %355 = vector.broadcast %cst_78 : f32 to vector<8x32xf32>
    %356 = arith.addf %355, %354 : vector<8x32xf32>
    %357 = arith.divf %355, %356 : vector<8x32xf32>
    %358 = arith.mulf %349, %298 : vector<8x32xf32>
    %359 = arith.mulf %343, %351 : vector<8x32xf32>
    %360 = arith.addf %358, %359 : vector<8x32xf32>
    %361 = math.tanh %360 : vector<8x32xf32>
    %362 = arith.mulf %357, %361 : vector<8x32xf32>
    %363 = tpu.concatenate %362, %329 in 1 : vector<8x32xf32>, vector<8x32xf32> -> vector<8x64xf32>
    %cst_79 = arith.constant dense<0.000000e+00> : vector<8x128xf32>
    %364 = tpu.matmul %363, %19, %cst_79 {dimension_numbers = #tpu.dot_dimension_numbers<[1], [0], [0], [1], [0, 0, 1, 1], [], []>} : vector<8x64xf32>, vector<64x128xf32>, vector<8x128xf32> -> vector<8x128xf32>
    %365 = vector.broadcast %20 : vector<1x128xf32> to vector<8x128xf32>
    %366 = arith.addf %364, %365 : vector<8x128xf32>
    %367 = vector.extract_strided_slice %366 {offsets = [0, 0], sizes = [8, 32], strides = [1, 1]} : vector<8x128xf32> to vector<8x32xf32>
    %368 = arith.negf %367 : vector<8x32xf32>
    %369 = math.exp %368 : vector<8x32xf32>
    %cst_80 = arith.constant 1.000000e+00 : f32
    %370 = vector.broadcast %cst_80 : f32 to vector<8x32xf32>
    %371 = arith.addf %370, %369 : vector<8x32xf32>
    %372 = arith.divf %370, %371 : vector<8x32xf32>
    %373 = vector.extract_strided_slice %366 {offsets = [0, 32], sizes = [8, 32], strides = [1, 1]} : vector<8x128xf32> to vector<8x32xf32>
    %374 = arith.negf %373 : vector<8x32xf32>
    %375 = math.exp %374 : vector<8x32xf32>
    %cst_81 = arith.constant 1.000000e+00 : f32
    %376 = vector.broadcast %cst_81 : f32 to vector<8x32xf32>
    %377 = arith.addf %376, %375 : vector<8x32xf32>
    %378 = arith.divf %376, %377 : vector<8x32xf32>
    %379 = vector.extract_strided_slice %366 {offsets = [0, 64], sizes = [8, 32], strides = [1, 1]} : vector<8x128xf32> to vector<8x32xf32>
    %380 = math.tanh %379 : vector<8x32xf32>
    %381 = vector.extract_strided_slice %366 {offsets = [0, 96], sizes = [8, 32], strides = [1, 1]} : vector<8x128xf32> to vector<8x32xf32>
    %382 = arith.negf %381 : vector<8x32xf32>
    %383 = math.exp %382 : vector<8x32xf32>
    %cst_82 = arith.constant 1.000000e+00 : f32
    %384 = vector.broadcast %cst_82 : f32 to vector<8x32xf32>
    %385 = arith.addf %384, %383 : vector<8x32xf32>
    %386 = arith.divf %384, %385 : vector<8x32xf32>
    %387 = arith.mulf %378, %327 : vector<8x32xf32>
    %388 = arith.mulf %372, %380 : vector<8x32xf32>
    %389 = arith.addf %387, %388 : vector<8x32xf32>
    %390 = math.tanh %389 : vector<8x32xf32>
    %391 = arith.mulf %386, %390 : vector<8x32xf32>
    %392 = arith.index_cast %333 : i32 to index
    %c0_83 = arith.constant 0 : index
    %393 = vector.load %arg13[%392, %c0_83] : memref<64x32xf32, #tpu.memory_space<vmem>>, vector<8x32xf32>
    tpu.vector_store %arg13[%392, %c0_83], %391 {strides = array<i32>} : memref<64x32xf32, #tpu.memory_space<vmem>>, vector<8x32xf32>,
    %c6_i32 = arith.constant 6 : i32
    %c8_i32_84 = arith.constant 8 : i32
    %394 = arith.muli %c6_i32, %c8_i32_84 : i32
    %395 = tpu.assume_multiple %394, 8 : i32
    %396 = arith.index_cast %395 : i32 to index
    %c0_85 = arith.constant 0 : index
    %397 = vector.load %arg12[%396, %c0_85] : memref<64x128xf32, #tpu.memory_space<vmem>>, vector<8x128xf32>
    %cst_86 = arith.constant dense<0.000000e+00> : vector<8x128xf32>
    %398 = tpu.matmul %362, %18, %cst_86 {dimension_numbers = #tpu.dot_dimension_numbers<[1], [0], [0], [1], [0, 0, 1, 1], [], []>} : vector<8x32xf32>, vector<32x128xf32>, vector<8x128xf32> -> vector<8x128xf32>
    %399 = arith.addf %397, %398 : vector<8x128xf32>
    %400 = vector.extract_strided_slice %399 {offsets = [0, 0], sizes = [8, 32], strides = [1, 1]} : vector<8x128xf32> to vector<8x32xf32>
    %401 = arith.negf %400 : vector<8x32xf32>
    %402 = math.exp %401 : vector<8x32xf32>
    %cst_87 = arith.constant 1.000000e+00 : f32
    %403 = vector.broadcast %cst_87 : f32 to vector<8x32xf32>
    %404 = arith.addf %403, %402 : vector<8x32xf32>
    %405 = arith.divf %403, %404 : vector<8x32xf32>
    %406 = vector.extract_strided_slice %399 {offsets = [0, 32], sizes = [8, 32], strides = [1, 1]} : vector<8x128xf32> to vector<8x32xf32>
    %407 = arith.negf %406 : vector<8x32xf32>
    %408 = math.exp %407 : vector<8x32xf32>
    %cst_88 = arith.constant 1.000000e+00 : f32
    %409 = vector.broadcast %cst_88 : f32 to vector<8x32xf32>
    %410 = arith.addf %409, %408 : vector<8x32xf32>
    %411 = arith.divf %409, %410 : vector<8x32xf32>
    %412 = vector.extract_strided_slice %399 {offsets = [0, 64], sizes = [8, 32], strides = [1, 1]} : vector<8x128xf32> to vector<8x32xf32>
    %413 = math.tanh %412 : vector<8x32xf32>
    %414 = vector.extract_strided_slice %399 {offsets = [0, 96], sizes = [8, 32], strides = [1, 1]} : vector<8x128xf32> to vector<8x32xf32>
    %415 = arith.negf %414 : vector<8x32xf32>
    %416 = math.exp %415 : vector<8x32xf32>
    %cst_89 = arith.constant 1.000000e+00 : f32
    %417 = vector.broadcast %cst_89 : f32 to vector<8x32xf32>
    %418 = arith.addf %417, %416 : vector<8x32xf32>
    %419 = arith.divf %417, %418 : vector<8x32xf32>
    %420 = arith.mulf %411, %360 : vector<8x32xf32>
    %421 = arith.mulf %405, %413 : vector<8x32xf32>
    %422 = arith.addf %420, %421 : vector<8x32xf32>
    %423 = math.tanh %422 : vector<8x32xf32>
    %424 = arith.mulf %419, %423 : vector<8x32xf32>
    %425 = tpu.concatenate %424, %391 in 1 : vector<8x32xf32>, vector<8x32xf32> -> vector<8x64xf32>
    %cst_90 = arith.constant dense<0.000000e+00> : vector<8x128xf32>
    %426 = tpu.matmul %425, %19, %cst_90 {dimension_numbers = #tpu.dot_dimension_numbers<[1], [0], [0], [1], [0, 0, 1, 1], [], []>} : vector<8x64xf32>, vector<64x128xf32>, vector<8x128xf32> -> vector<8x128xf32>
    %427 = vector.broadcast %20 : vector<1x128xf32> to vector<8x128xf32>
    %428 = arith.addf %426, %427 : vector<8x128xf32>
    %429 = vector.extract_strided_slice %428 {offsets = [0, 0], sizes = [8, 32], strides = [1, 1]} : vector<8x128xf32> to vector<8x32xf32>
    %430 = arith.negf %429 : vector<8x32xf32>
    %431 = math.exp %430 : vector<8x32xf32>
    %cst_91 = arith.constant 1.000000e+00 : f32
    %432 = vector.broadcast %cst_91 : f32 to vector<8x32xf32>
    %433 = arith.addf %432, %431 : vector<8x32xf32>
    %434 = arith.divf %432, %433 : vector<8x32xf32>
    %435 = vector.extract_strided_slice %428 {offsets = [0, 32], sizes = [8, 32], strides = [1, 1]} : vector<8x128xf32> to vector<8x32xf32>
    %436 = arith.negf %435 : vector<8x32xf32>
    %437 = math.exp %436 : vector<8x32xf32>
    %cst_92 = arith.constant 1.000000e+00 : f32
    %438 = vector.broadcast %cst_92 : f32 to vector<8x32xf32>
    %439 = arith.addf %438, %437 : vector<8x32xf32>
    %440 = arith.divf %438, %439 : vector<8x32xf32>
    %441 = vector.extract_strided_slice %428 {offsets = [0, 64], sizes = [8, 32], strides = [1, 1]} : vector<8x128xf32> to vector<8x32xf32>
    %442 = math.tanh %441 : vector<8x32xf32>
    %443 = vector.extract_strided_slice %428 {offsets = [0, 96], sizes = [8, 32], strides = [1, 1]} : vector<8x128xf32> to vector<8x32xf32>
    %444 = arith.negf %443 : vector<8x32xf32>
    %445 = math.exp %444 : vector<8x32xf32>
    %cst_93 = arith.constant 1.000000e+00 : f32
    %446 = vector.broadcast %cst_93 : f32 to vector<8x32xf32>
    %447 = arith.addf %446, %445 : vector<8x32xf32>
    %448 = arith.divf %446, %447 : vector<8x32xf32>
    %449 = arith.mulf %440, %389 : vector<8x32xf32>
    %450 = arith.mulf %434, %442 : vector<8x32xf32>
    %451 = arith.addf %449, %450 : vector<8x32xf32>
    %452 = math.tanh %451 : vector<8x32xf32>
    %453 = arith.mulf %448, %452 : vector<8x32xf32>
    %454 = arith.index_cast %395 : i32 to index
    %c0_94 = arith.constant 0 : index
    %455 = vector.load %arg13[%454, %c0_94] : memref<64x32xf32, #tpu.memory_space<vmem>>, vector<8x32xf32>
    tpu.vector_store %arg13[%454, %c0_94], %453 {strides = array<i32>} : memref<64x32xf32, #tpu.memory_space<vmem>>, vector<8x32xf32>,
    %c7_i32 = arith.constant 7 : i32
    %c8_i32_95 = arith.constant 8 : i32
    %456 = arith.muli %c7_i32, %c8_i32_95 : i32
    %457 = tpu.assume_multiple %456, 8 : i32
    %458 = arith.index_cast %457 : i32 to index
    %c0_96 = arith.constant 0 : index
    %459 = vector.load %arg12[%458, %c0_96] : memref<64x128xf32, #tpu.memory_space<vmem>>, vector<8x128xf32>
    %cst_97 = arith.constant dense<0.000000e+00> : vector<8x128xf32>
    %460 = tpu.matmul %424, %18, %cst_97 {dimension_numbers = #tpu.dot_dimension_numbers<[1], [0], [0], [1], [0, 0, 1, 1], [], []>} : vector<8x32xf32>, vector<32x128xf32>, vector<8x128xf32> -> vector<8x128xf32>
    %461 = arith.addf %459, %460 : vector<8x128xf32>
    %462 = vector.extract_strided_slice %461 {offsets = [0, 0], sizes = [8, 32], strides = [1, 1]} : vector<8x128xf32> to vector<8x32xf32>
    %463 = arith.negf %462 : vector<8x32xf32>
    %464 = math.exp %463 : vector<8x32xf32>
    %cst_98 = arith.constant 1.000000e+00 : f32
    %465 = vector.broadcast %cst_98 : f32 to vector<8x32xf32>
    %466 = arith.addf %465, %464 : vector<8x32xf32>
    %467 = arith.divf %465, %466 : vector<8x32xf32>
    %468 = vector.extract_strided_slice %461 {offsets = [0, 32], sizes = [8, 32], strides = [1, 1]} : vector<8x128xf32> to vector<8x32xf32>
    %469 = arith.negf %468 : vector<8x32xf32>
    %470 = math.exp %469 : vector<8x32xf32>
    %cst_99 = arith.constant 1.000000e+00 : f32
    %471 = vector.broadcast %cst_99 : f32 to vector<8x32xf32>
    %472 = arith.addf %471, %470 : vector<8x32xf32>
    %473 = arith.divf %471, %472 : vector<8x32xf32>
    %474 = vector.extract_strided_slice %461 {offsets = [0, 64], sizes = [8, 32], strides = [1, 1]} : vector<8x128xf32> to vector<8x32xf32>
    %475 = math.tanh %474 : vector<8x32xf32>
    %476 = vector.extract_strided_slice %461 {offsets = [0, 96], sizes = [8, 32], strides = [1, 1]} : vector<8x128xf32> to vector<8x32xf32>
    %477 = arith.negf %476 : vector<8x32xf32>
    %478 = math.exp %477 : vector<8x32xf32>
    %cst_100 = arith.constant 1.000000e+00 : f32
    %479 = vector.broadcast %cst_100 : f32 to vector<8x32xf32>
    %480 = arith.addf %479, %478 : vector<8x32xf32>
    %481 = arith.divf %479, %480 : vector<8x32xf32>
    %482 = arith.mulf %473, %422 : vector<8x32xf32>
    %483 = arith.mulf %467, %475 : vector<8x32xf32>
    %484 = arith.addf %482, %483 : vector<8x32xf32>
    %485 = math.tanh %484 : vector<8x32xf32>
    %486 = arith.mulf %481, %485 : vector<8x32xf32>
    %487 = tpu.concatenate %486, %453 in 1 : vector<8x32xf32>, vector<8x32xf32> -> vector<8x64xf32>
    %cst_101 = arith.constant dense<0.000000e+00> : vector<8x128xf32>
    %488 = tpu.matmul %487, %19, %cst_101 {dimension_numbers = #tpu.dot_dimension_numbers<[1], [0], [0], [1], [0, 0, 1, 1], [], []>} : vector<8x64xf32>, vector<64x128xf32>, vector<8x128xf32> -> vector<8x128xf32>
    %489 = vector.broadcast %20 : vector<1x128xf32> to vector<8x128xf32>
    %490 = arith.addf %488, %489 : vector<8x128xf32>
    %491 = vector.extract_strided_slice %490 {offsets = [0, 0], sizes = [8, 32], strides = [1, 1]} : vector<8x128xf32> to vector<8x32xf32>
    %492 = arith.negf %491 : vector<8x32xf32>
    %493 = math.exp %492 : vector<8x32xf32>
    %cst_102 = arith.constant 1.000000e+00 : f32
    %494 = vector.broadcast %cst_102 : f32 to vector<8x32xf32>
    %495 = arith.addf %494, %493 : vector<8x32xf32>
    %496 = arith.divf %494, %495 : vector<8x32xf32>
    %497 = vector.extract_strided_slice %490 {offsets = [0, 32], sizes = [8, 32], strides = [1, 1]} : vector<8x128xf32> to vector<8x32xf32>
    %498 = arith.negf %497 : vector<8x32xf32>
    %499 = math.exp %498 : vector<8x32xf32>
    %cst_103 = arith.constant 1.000000e+00 : f32
    %500 = vector.broadcast %cst_103 : f32 to vector<8x32xf32>
    %501 = arith.addf %500, %499 : vector<8x32xf32>
    %502 = arith.divf %500, %501 : vector<8x32xf32>
    %503 = vector.extract_strided_slice %490 {offsets = [0, 64], sizes = [8, 32], strides = [1, 1]} : vector<8x128xf32> to vector<8x32xf32>
    %504 = math.tanh %503 : vector<8x32xf32>
    %505 = vector.extract_strided_slice %490 {offsets = [0, 96], sizes = [8, 32], strides = [1, 1]} : vector<8x128xf32> to vector<8x32xf32>
    %506 = arith.negf %505 : vector<8x32xf32>
    %507 = math.exp %506 : vector<8x32xf32>
    %cst_104 = arith.constant 1.000000e+00 : f32
    %508 = vector.broadcast %cst_104 : f32 to vector<8x32xf32>
    %509 = arith.addf %508, %507 : vector<8x32xf32>
    %510 = arith.divf %508, %509 : vector<8x32xf32>
    %511 = arith.mulf %502, %451 : vector<8x32xf32>
    %512 = arith.mulf %496, %504 : vector<8x32xf32>
    %513 = arith.addf %511, %512 : vector<8x32xf32>
    %514 = math.tanh %513 : vector<8x32xf32>
    %515 = arith.mulf %510, %514 : vector<8x32xf32>
    %516 = arith.index_cast %457 : i32 to index
    %c0_105 = arith.constant 0 : index
    %517 = vector.load %arg13[%516, %c0_105] : memref<64x32xf32, #tpu.memory_space<vmem>>, vector<8x32xf32>
    tpu.vector_store %arg13[%516, %c0_105], %515 {strides = array<i32>} : memref<64x32xf32, #tpu.memory_space<vmem>>, vector<8x32xf32>,
    %c8_i32_106 = arith.constant 8 : i32
    %c0_107 = arith.constant 0 : index
    %c0_108 = arith.constant 0 : index
    %518 = vector.load %arg13[%c0_107, %c0_108] : memref<64x32xf32, #tpu.memory_space<vmem>>, vector<64x32xf32>
    %c0_109 = arith.constant 0 : index
    %c0_110 = arith.constant 0 : index
    %519 = vector.load %arg9[%c0_109, %c0_110] : memref<32x128xf32, #tpu.memory_space<vmem>>, vector<32x128xf32>
    %cst_111 = arith.constant dense<0.000000e+00> : vector<64x128xf32>
    %520 = tpu.matmul %518, %519, %cst_111 {dimension_numbers = #tpu.dot_dimension_numbers<[1], [0], [0], [1], [0, 0, 1, 1], [], []>} : vector<64x32xf32>, vector<32x128xf32>, vector<64x128xf32> -> vector<64x128xf32>
    %c0_112 = arith.constant 0 : index
    %c0_113 = arith.constant 0 : index
    %521 = vector.load %arg10[%c0_112, %c0_113] : memref<1x128xf32, #tpu.memory_space<vmem>>, vector<1x128xf32>
    %522 = vector.broadcast %521 : vector<1x128xf32> to vector<64x128xf32>
    %523 = arith.addf %520, %522 : vector<64x128xf32>
    %c0_114 = arith.constant 0 : index
    %c0_115 = arith.constant 0 : index
    %524 = vector.load %arg11[%c0_114, %c0_115] : memref<64x128xf32, #tpu.memory_space<vmem>>, vector<64x128xf32>
    tpu.vector_store %arg11[%c0_114, %c0_115], %523 {strides = array<i32>} : memref<64x128xf32, #tpu.memory_space<vmem>>, vector<64x128xf32>,
    return
  }
  func.func @transform_0(%arg0: i32) -> (i32, i32) {
    %c0_i32 = arith.constant 0 : i32
    %c0_i32_0 = arith.constant 0 : i32
    return %arg0, %c0_i32 : i32, i32
  }
  func.func @transform_1(%arg0: i32) -> (i32, i32) {
    %c0_i32 = arith.constant 0 : i32
    %c0_i32_0 = arith.constant 0 : i32
    %c0_i32_1 = arith.constant 0 : i32
    return %c0_i32, %c0_i32_0 : i32, i32
  }
  func.func @transform_2(%arg0: i32) -> (i32, i32) {
    %c0_i32 = arith.constant 0 : i32
    %c0_i32_0 = arith.constant 0 : i32
    %c0_i32_1 = arith.constant 0 : i32
    return %c0_i32, %c0_i32_0 : i32, i32
  }
  func.func @transform_3(%arg0: i32) -> (i32, i32) {
    %c0_i32 = arith.constant 0 : i32
    %c0_i32_0 = arith.constant 0 : i32
    return %arg0, %c0_i32 : i32, i32
  }
  func.func @transform_4(%arg0: i32) -> (i32, i32) {
    %c0_i32 = arith.constant 0 : i32
    %c0_i32_0 = arith.constant 0 : i32
    %c0_i32_1 = arith.constant 0 : i32
    return %c0_i32, %c0_i32_0 : i32, i32
  }
  func.func @transform_5(%arg0: i32) -> (i32, i32) {
    %c0_i32 = arith.constant 0 : i32
    %c0_i32_0 = arith.constant 0 : i32
    %c0_i32_1 = arith.constant 0 : i32
    return %c0_i32, %c0_i32_0 : i32, i32
  }
  func.func @transform_6(%arg0: i32) -> (i32, i32) {
    %c0_i32 = arith.constant 0 : i32
    %c0_i32_0 = arith.constant 0 : i32
    %c0_i32_1 = arith.constant 0 : i32
    return %c0_i32, %c0_i32_0 : i32, i32
  }
  func.func @transform_7(%arg0: i32) -> (i32, i32) {
    %c0_i32 = arith.constant 0 : i32
    %c0_i32_0 = arith.constant 0 : i32
    %c0_i32_1 = arith.constant 0 : i32
    return %c0_i32, %c0_i32_0 : i32, i32
  }
  func.func @transform_8(%arg0: i32) -> (i32, i32) {
    %c0_i32 = arith.constant 0 : i32
    %c0_i32_0 = arith.constant 0 : i32
    %c0_i32_1 = arith.constant 0 : i32
    return %c0_i32, %c0_i32_0 : i32, i32
  }
  func.func @transform_9(%arg0: i32) -> (i32, i32) {
    %c0_i32 = arith.constant 0 : i32
    %c0_i32_0 = arith.constant 0 : i32
    %c0_i32_1 = arith.constant 0 : i32
    return %c0_i32, %c0_i32_0 : i32, i32
  }
  func.func @transform_10(%arg0: i32) -> (i32, i32) {
    %c0_i32 = arith.constant 0 : i32
    %c0_i32_0 = arith.constant 0 : i32
    return %arg0, %c0_i32 : i32, i32
  }
}

</mosaic_0001>

<bundles_post_ra>
// kernel: caption_generator_forward.1
= control target key start
LH: loop header
LB: loop body
LE: loop exit
PB: predicated region body
PF: predicated region fallthrough
CT: control target
= control target key end

     0   :  { %15 = vsyncpa [#allocation5], 0  ;;  %s2405_s16 = smov [#allocation4]   ;;  %s2406_s18 = smov 64   ;;  %s2975_s0 = inlined_call_operand.vmem [shape: bf16[8,768], index: 0, kind: input, shape index: {}]   ;;  %s2976_s1 = inlined_call_operand.hbm [shape: bf16[768,128], index: 1, kind: input, shape index: {}]   ;;  %s2977_s2 = inlined_call_operand.vmem [shape: f32[1,128], index: 2, kind: input, shape index: {}]   ;;  %s2978_s3 = inlined_call_operand.vmem [shape: s32[64,1], index: 3, kind: input, shape index: {}]   ;;  %s2979_s4 = inlined_call_operand.vmem [shape: bf16[128,128], index: 4, kind: input, shape index: {}]   ;;  %s2980_s5 = inlined_call_operand.vmem [shape: f32[32,128], index: 5, kind: input, shape index: {}]   ;;  %s2981_s6 = inlined_call_operand.vmem [shape: f32[64,128], index: 6, kind: input, shape index: {}]   ;;  %s2982_s7 = inlined_call_operand.vmem [shape: f32[1,128], index: 7, kind: input, shape index: {}]   ;;  %s2983_s8 = inlined_call_operand.vmem [shape: f32[32,128], index: 8, kind: input, shape index: {}]   ;;  %s2984_s9 = inlined_call_operand.vmem [shape: f32[1,128], index: 9, kind: input, shape index: {}]   ;;  %s2985_s10 = inlined_call_operand.vmem [shape: f32[64,128], index: 10, kind: output, shape index: {}]  }
   0x1   :  { %s22_s15 = sshll.u32 %s2976_s1, 4  ;;  %s24_s17 = sshll.u32 %s2405_s16, 4  ;;  %s23_s15 = int_to_ptr.hbm [resolvable:$true] %s22_s15  ;;  %s25_s17 = int_to_ptr.vmem [resolvable:$true] %s24_s17 }
   0x2   :  { %s2407_s19 = smov 4  }
   0x3   :  { %30 = dma.hbm_to_vmem [thread:$0]  %s23_s15, 6144, %s25_s17, [#allocation5], %s2406_s18, %s2406_s18, %s2407_s19  }
   0x4   :  { %2403 = dma.done.wait [#allocation5], 6144  }
   0x5   :  { %2404 = vsyncadd [#allocation5], 4294961152  ;;  %v2408_v0 = vmov 0   ;;  %v541_v1 = vld [vmem:[%s2978_s3] sm:$0xff]  ;;  %v2186_v2 = vld [vmem:[#allocation4 + $0x38] sm:$0xff]  ;;  %vm718_vm7 = vcmask 261120  }
   0x6   :  { %2242 = vset.pattern.permute.xlu0 %v2408_v0  ;;  %2243 = vset.pattern.permute.xlu1 %v2408_v0  ;;  %v2185_v3 = vld [vmem:[#allocation4 + $0x30] sm:$0xff]  ;;  %v2194_v4 = vld [vmem:[#allocation4 + $0x78] sm:$0xff]  ;;  %v542_v7 = vld [vmem:[%s2978_s3 + $0x8] sm:$0xff]  ;;  %vm788_vm8 = vcmask 523264  }
   0x7   :  { %552 = vperm.xlu0 %2242, %v541_v1   ;;  %463 = vmatpush.bf16.msra.mxu2 %v2186_v2  ;;  %v2193_v5 = vld [vmem:[#allocation4 + $0x70] sm:$0xff]  ;;  %v2210_v6 = vld [vmem:[#allocation4 + $0xf8] sm:$0xff]  ;;  %v2184_v8 = vld [vmem:[#allocation4 + $0x28] sm:$0xff] }
   0x8   :  { %476 = vmatpush.bf16.msra.mxu1 %v2194_v4  ;;  %502 = vmatpush.bf16.msra.mxu3 %v2210_v6  ;;  %v2209_v9 = vld [vmem:[#allocation4 + $0xf0] sm:$0xff]  ;;  %v2218_v10 = vld [vmem:[#allocation4 + $0x138] sm:$0xff]  ;;  %v2192_v11 = vld [vmem:[#allocation4 + $0x68] sm:$0xff] }
   0x9   :  { %515 = vmatpush.bf16.msra.mxu0 %v2218_v10  ;;  %v2183_v12 = vld [vmem:[#allocation4 + $0x20] sm:$0xff]  ;;  %v2208_v13 = vld [vmem:[#allocation4 + $0xe8] sm:$0xff]  ;;  %v2217_v14 = vld [vmem:[#allocation4 + $0x130] sm:$0xff] }
   0xa   :  { %v2191_v15 = vld [vmem:[#allocation4 + $0x60] sm:$0xff]  ;;  %v2182_v16 = vld [vmem:[#allocation4 + $0x18] sm:$0xff]  ;;  %v2216_v18 = vld [vmem:[#allocation4 + $0x128] sm:$0xff] }
   0xb   :  { %464 = vmatpush.bf16.msra.mxu2 %v2185_v3  ;;  %v2207_v17 = vld [vmem:[#allocation4 + $0xe0] sm:$0xff]  ;;  %v2190_v19 = vld [vmem:[#allocation4 + $0x58] sm:$0xff]  ;;  %v2181_v20 = vld [vmem:[#allocation4 + $0x10] sm:$0xff] }
   0xc   :  { %477 = vmatpush.bf16.msra.mxu1 %v2193_v5  ;;  %503 = vmatpush.bf16.msra.mxu3 %v2209_v9  ;;  %v2206_v21 = vld [vmem:[#allocation4 + $0xd8] sm:$0xff]  ;;  %v2215_v22 = vld [vmem:[#allocation4 + $0x120] sm:$0xff]  ;;  %v2189_v23 = vld [vmem:[#allocation4 + $0x50] sm:$0xff] }
   0xd   :  { %516 = vmatpush.bf16.msra.mxu0 %v2217_v14  ;;  %v2180_v24 = vld [vmem:[#allocation4 + $0x8] sm:$0xff]  ;;  %v51_v25 = vld [vmem:[%s2975_s0] sm:$0xff]  ;;  %v2205_v26 = vld [vmem:[#allocation4 + $0xd0] sm:$0xff]  ;;  %v2409_v14 = vmov 0.0  }
   0xe   :  { %v2214_v27 = vld [vmem:[#allocation4 + $0x118] sm:$0xff]  ;;  %v2188_v28 = vld [vmem:[#allocation4 + $0x48] sm:$0xff]  ;;  %v157_v29 = vunpack.c.l.b16 %v51_v25  ;;  %v2179_v30 = vld [vmem:[#allocation4] sm:$0xff]  ;;  %v158_v33 = vunpack.c.h.b16 %v51_v25 }
   0xf   :  { %555 = vperm.xlu0 %2242, %v542_v7   ;;  %465 = vmatpush.bf16.msra.mxu2 %v2184_v8  ;;  %v2202_v31 = vld [vmem:[#allocation4 + $0xb8] sm:$0xff]  ;;  %v2204_v32 = vld [vmem:[#allocation4 + $0xc8] sm:$0xff]  ;;  %v2187_v34 = vld [vmem:[#allocation4 + $0x40] sm:$0xff] }
  0x10   :  { %478 = vmatpush.bf16.msra.mxu1 %v2192_v11  ;;  %504 = vmatpush.bf16.msra.mxu3 %v2208_v13  ;;  %v2213_v35 = vld [vmem:[#allocation4 + $0x110] sm:$0xff]  ;;  %v2226_v36 = vld [vmem:[#allocation4 + $0x178] sm:$0xff]  ;;  %v163_v37 = vpack.c.b16 %v157_v29, %v157_v29  ;;  %v164_v39 = vpack.c.b16 %v158_v33, %v158_v33  ;;  %v52_v40 = vld [vmem:[%s2975_s0 + $0x8] sm:$0xff] }
  0x11   :  { %517 = vmatpush.bf16.msra.mxu0 %v2216_v18  ;;  %v2201_v38 = vld [vmem:[#allocation4 + $0xb0] sm:$0xff]  ;;  %v2203_v41 = vld [vmem:[#allocation4 + $0xc0] sm:$0xff]  ;;  %v160_v42 = vunpack.c.h.b16 %v52_v40  ;;  %v2212_v43 = vld [vmem:[#allocation4 + $0x108] sm:$0xff]  ;;  %v159_v61 = vunpack.c.l.b16 %v52_v40 }
  0x12   :  { %v2225_v44 = vld [vmem:[#allocation4 + $0x170] sm:$0xff]  ;;  %v2200_v45 = vld [vmem:[#allocation4 + $0xa8] sm:$0xff]  ;;  %v2211_v47 = vld [vmem:[#allocation4 + $0x100] sm:$0xff] }
  0x13   :  { %466 = vmatpush.bf16.msra.mxu2 %v2183_v12  ;;  %v166_v46 = vpack.c.b16 %v160_v42, %v160_v42  ;;  %v2224_v48 = vld [vmem:[#allocation4 + $0x168] sm:$0xff]  ;;  %v2199_v49 = vld [vmem:[#allocation4 + $0xa0] sm:$0xff]  ;;  %v53_v50 = vld [vmem:[%s2975_s0 + $0x10] sm:$0xff]  ;;  %v165_v2 = vpack.c.b16 %v159_v61, %v159_v61 }
  0x14   :  { %479 = vmatpush.bf16.msra.mxu1 %v2191_v15  ;;  %505 = vmatpush.bf16.msra.mxu3 %v2207_v17  ;;  %v2223_v51 = vld [vmem:[#allocation4 + $0x160] sm:$0xff]  ;;  %v161_v52 = vunpack.c.l.b16 %v53_v50  ;;  %v2198_v53 = vld [vmem:[#allocation4 + $0x98] sm:$0xff]  ;;  %v2197_v57 = vld [vmem:[#allocation4 + $0x90] sm:$0xff]  ;;  %v162_v0 = vunpack.c.h.b16 %v53_v50 }
  0x15   :  { %518 = vmatpush.bf16.msra.mxu0 %v2215_v22  ;;  %v2490_v55 = vld [vmem:[%s2980_s5 + $0x18] sm:$0xff]  ;;  %v2221_v58 = vld [vmem:[#allocation4 + $0x150] sm:$0xff]  ;;  %v2196_v59 = vld [vmem:[#allocation4 + $0x88] sm:$0xff] }
  0x16   :  { %v167_v54 = vpack.c.b16 %v161_v52, %v161_v52  ;;  %v2222_v56 = vld [vmem:[#allocation4 + $0x158] sm:$0xff]  ;;  %v2220_v60 = vld [vmem:[#allocation4 + $0x148] sm:$0xff]  ;;  %v2195_v62 = vld [vmem:[#allocation4 + $0x80] sm:$0xff]  ;;  %v168_v4 = vpack.c.b16 %v162_v0, %v162_v0 }
  0x17   :  { %467 = vmatpush.bf16.msra.mxu2 %v2182_v16  ;;  %v2234_v63 = vld [vmem:[%s2979_s4 + $0x38] sm:$0xff]  ;;  %v2219_v1 = vld [vmem:[#allocation4 + $0x140] sm:$0xff]  ;;  %v2233_v3 = vld [vmem:[%s2979_s4 + $0x30] sm:$0xff]  ;;  %v549_v16 = vlaneseq }
  0x18   :  { %480 = vmatpush.bf16.msra.mxu1 %v2190_v19  ;;  %506 = vmatpush.bf16.msra.mxu3 %v2206_v21  ;;  %v2232_v5 = vld [vmem:[%s2979_s4 + $0x28] sm:$0xff]  ;;  %v2231_v6 = vld [vmem:[%s2979_s4 + $0x20] sm:$0xff]  ;;  %v2230_v7 = vld [vmem:[%s2979_s4 + $0x18] sm:$0xff]  ;;  %v2410_v19 = vmov 1.0|1.0  }
  0x19   :  { %519 = vmatpush.bf16.msra.mxu0 %v2214_v27  ;;  %v2229_v8 = vld [vmem:[%s2979_s4 + $0x10] sm:$0xff]  ;;  %v2228_v10 = vld [vmem:[%s2979_s4 + $0x8] sm:$0xff]  ;;  %v2227_v12 = vld [vmem:[%s2979_s4] sm:$0xff]  ;;  %v2547_v17 = vand.u32 127, %v549_v16 }
  0x1a   :  { %v2516_v9 = vld [vmem:[%s2980_s5 + $0x10] sm:$0xff]  ;;  %v2524_v11 = vld [vmem:[%s2980_s5 + $0x8] sm:$0xff]  ;;  %v2538_v13 = vld [vmem:[%s2980_s5] sm:$0xff] }
  0x1b   :  { %468 = vmatpush.bf16.msra.mxu2 %v2181_v20  ;;  %v2244_v21 = vld [vmem:[%s2977_s2] ss:$0 sm:$0xff]  ;;  %s2411_s2 = smov 32   ;;  %v2567_v0 = vld [vmem:[%s2981_s6 + $0x38] sm:$0xff] }
  0x1c   :  { %481 = vmatpush.bf16.msra.mxu1 %v2189_v23  ;;  %507 = vmatpush.bf16.msra.mxu3 %v2205_v26 }
  0x1d   :  { %520 = vmatpush.bf16.msra.mxu0 %v2213_v35 }
  0x1f   :  { %469 = vmatpush.bf16.msra.mxu2 %v2180_v24 }
  0x20   :  { %482 = vmatpush.bf16.msra.mxu1 %v2188_v28  ;;  %508 = vmatpush.bf16.msra.mxu3 %v2204_v32 }
  0x21   :  { %521 = vmatpush.bf16.msra.mxu0 %v2212_v43 }
  0x23   :  { %470 = vmatpush.bf16.msra.mxu2 %v2179_v30 }
  0x24   :  { %483 = vmatpush.bf16.msra.mxu1 %v2187_v34  ;;  %509 = vmatpush.bf16.msra.mxu3 %v2203_v41 }
  0x25   :  { %522 = vmatpush.bf16.msra.mxu0 %v2211_v47 }
  0x26   :  { %471 = vmatmul.bf16.vlgmr.msra.gmra.mxu2 %v163_v37 }
  0x27   :  { %489 = vmatpush.bf16.msrb.mxu2 %v2202_v31  ;;  %484 = vmatmul.bf16.vlgmr.msra.gmra.mxu1 %v164_v39 }
  0x28   :  { %528 = vmatpush.bf16.msrb.mxu1 %v2226_v36  ;;  %510 = vmatmul.bf16.vlgmr.msra.gmra.mxu3 %v166_v46 }
  0x29   :  { %523 = vmatmul.bf16.vlgmr.msra.gmra.mxu0 %v167_v54  ;;  %734 = vmatpush.msrb.mxu3 %v2490_v55 }
  0x2a   :  { %1142 = vmatpush.msrb.mxu0 %v2490_v55 }
  0x2b   :  { %490 = vmatpush.bf16.msrb.mxu2 %v2201_v38  ;;  %735 = vmatpush.msrb.mxu3 %v2516_v9 }
  0x2c   :  { %529 = vmatpush.bf16.msrb.mxu1 %v2225_v44  ;;  %1143 = vmatpush.msrb.mxu0 %v2516_v9 }
  0x2d   :  { %736 = vmatpush.msrb.mxu3 %v2524_v11 }
  0x2e   :  { %1144 = vmatpush.msrb.mxu0 %v2524_v11 }
  0x2f   :  { %491 = vmatpush.bf16.msrb.mxu2 %v2200_v45  ;;  %737 = vmatpush.msrb.mxu3 %v2538_v13 }
  0x30   :  { %530 = vmatpush.bf16.msrb.mxu1 %v2224_v48  ;;  %1145 = vmatpush.msrb.mxu0 %v2538_v13 }
  0x31   :  { %800 = vmatpush.msra.mxu3 %v2567_v0 }
  0x32   :  { %1278 = vmatpush.msra.mxu0 %v2490_v55 }
  0x33   :  { %492 = vmatpush.bf16.msrb.mxu2 %v2199_v49 }
  0x34   :  { %531 = vmatpush.bf16.msrb.mxu1 %v2223_v51  ;;  %1279 = vmatpush.msra.mxu0 %v2516_v9 }
  0x36   :  { %1280 = vmatpush.msra.mxu0 %v2524_v11 }
  0x37   :  { %493 = vmatpush.bf16.msrb.mxu2 %v2198_v53 }
  0x38   :  { %532 = vmatpush.bf16.msrb.mxu1 %v2222_v56  ;;  %738 = vmatmul.f32.vlgmr.msrb.gmra.mxu3 %v2409_v14 }
  0x39   :  { %1281 = vmatpush.msra.mxu0 %v2538_v13 }
  0x3b   :  { %494 = vmatpush.bf16.msrb.mxu2 %v2197_v57 }
  0x3c   :  { %533 = vmatpush.bf16.msrb.mxu1 %v2221_v58 }
  0x3f   :  { %495 = vmatpush.bf16.msrb.mxu2 %v2196_v59 }
  0x40   :  { %534 = vmatpush.bf16.msrb.mxu1 %v2220_v60 }
  0x43   :  { %496 = vmatpush.bf16.msrb.mxu2 %v2195_v62 }
  0x44   :  { %535 = vmatpush.bf16.msrb.mxu1 %v2219_v1  ;;  %v2572_v1 = vld [vmem:[%s2981_s6 + $0x30] sm:$0xff] }
  0x45   :  { %801 = vmatpush.msra.mxu3 %v2572_v1 }
  0x46   :  { %497 = vmatmul.bf16.vlgmr.msrb.gmra.mxu2 %v165_v2  ;;  %v2579_v2 = vld [vmem:[%s2981_s6 + $0x28] sm:$0xff] }
  0x47   :  { %667 = vmatpush.bf16.msra.mxu2 %v2234_v63  ;;  %536 = vmatmul.bf16.vlgmr.msrb.gmra.mxu1 %v168_v4  ;;  %v2593_v4 = vld [vmem:[%s2981_s6 + $0x18] sm:$0xff] }
  0x48   :  { %1006 = vmatpush.msra.mxu1 %v2490_v55  ;;  %802 = vmatpush.msra.mxu3 %v2579_v2 }
  0x4a   :  { %1007 = vmatpush.msra.mxu1 %v2516_v9 }
  0x4b   :  { %668 = vmatpush.bf16.msra.mxu2 %v2233_v3  ;;  %v2586_v3 = vld [vmem:[%s2981_s6 + $0x20] sm:$0xff] }
  0x4c   :  { %1008 = vmatpush.msra.mxu1 %v2524_v11  ;;  %803 = vmatpush.msra.mxu3 %v2586_v3 }
  0x4e   :  { %1009 = vmatpush.msra.mxu1 %v2538_v13  ;;  %804 = vmatpush.msra.mxu3 %v2593_v4 }
  0x4f   :  { %669 = vmatpush.bf16.msra.mxu2 %v2232_v5  ;;  %v2600_v5 = vld [vmem:[%s2981_s6 + $0x10] sm:$0xff] }
  0x50   :  { %1207 = vmatpush.msrb.mxu1 %v2567_v0  ;;  %805 = vmatpush.msra.mxu3 %v2600_v5 }
  0x52   :  { %1208 = vmatpush.msrb.mxu1 %v2572_v1 }
  0x53   :  { %670 = vmatpush.bf16.msra.mxu2 %v2231_v6  ;;  %v2607_v6 = vld [vmem:[%s2981_s6 + $0x8] sm:$0xff] }
  0x54   :  { %1209 = vmatpush.msrb.mxu1 %v2579_v2  ;;  %806 = vmatpush.msra.mxu3 %v2607_v6 }
  0x56   :  { %1210 = vmatpush.msrb.mxu1 %v2586_v3 }
  0x57   :  { %671 = vmatpush.bf16.msra.mxu2 %v2230_v7 }
  0x58   :  { %1211 = vmatpush.msrb.mxu1 %v2593_v4 }
  0x5a   :  { %1212 = vmatpush.msrb.mxu1 %v2600_v5 }
  0x5b   :  { %672 = vmatpush.bf16.msra.mxu2 %v2229_v8 }
  0x5c   :  { %1213 = vmatpush.msrb.mxu1 %v2607_v6 }
  0x5f   :  { %673 = vmatpush.bf16.msra.mxu2 %v2228_v10  ;;  %v2617_v10 = vld [vmem:[%s2981_s6] sm:$0xff] }
  0x60   :  { %807 = vmatpush.msra.mxu3 %v2617_v10  ;;  %1214 = vmatpush.msrb.mxu1 %v2617_v10 }
  0x62   :  { %870 = vmatpush.msrb.mxu3 %v2490_v55 }
  0x63   :  { %674 = vmatpush.bf16.msra.mxu2 %v2227_v12 }
  0x64   :  { %871 = vmatpush.msrb.mxu3 %v2516_v9 }
  0x66   :  { %872 = vmatpush.msrb.mxu3 %v2524_v11 }
  0x68   :  { %873 = vmatpush.msrb.mxu3 %v2538_v13 }
  0x79   :  { %v553_v15 = vpop.permute.xlu0 %552 }
  0x7a   :  { %vm575_vm0 = vcmp.eq.s32.totalorder %v553_v15, %v2547_v17  ;;  %v2647_v15 = vld [vmem:[%s2982_s7] ss:$0 sm:$0xff] }
  0x81   :  { %v556_v18 = vpop.permute.xlu0 %555 }
  0x82   :  { %vm576_vm1 = vcmp.eq.s32.totalorder %v556_v18, %v2547_v17 }
  0x83   :  { %vm2132_vm2 = vmpackc.low %vm576_vm1, %vm575_vm0 }
  0x84   :  { %2133 = vmatmul.msk.bf16.vlgmr.msra.gmra.mxu2 %vm2132_vm2, %v2410_v19 }
  0xa4   :  { %v485_v20 = vpop.f32.mrf.mxu1 }
  0xa6   :  { %v524_v27 = vpop.f32.mrf.mxu0 }
  0xa9   :  { %v472_v22 = vpop.f32.mrf.mxu2 }
  0xaa   :  { %v473_v23 = vadd.f32 %v2244_v21, %v472_v22 }
  0xab   :  { %v511_v26 = vpop.f32.mrf.mxu3 }
  0xac   :  { %v486_v24 = vadd.f32 %v485_v20, %v473_v23  ;;  %v487_v25 = vpop.f32.mrf.mxu1 }
  0xae   :  { %v526_v30 = vpop.f32.mrf.mxu0 }
  0xb1   :  { %v474_v28 = vpop.f32.mrf.mxu2 }
  0xb3   :  { %v513_v29 = vpop.f32.mrf.mxu3 }
  0xbb   :  { %v739_v40 = vpop.f32.mrf.mxu3 }
  0xc4   :  { %v537_v31 = vpop.f32.mrf.mxu1 }
  0xc9   :  { %v498_v32 = vpop.f32.mrf.mxu2 }
  0xca   :  { %v499_v33 = vadd.f32 %v498_v32, %v486_v24 }
  0xcc   :  { %v512_v34 = vadd.f32 %v511_v26, %v499_v33  ;;  %v539_v35 = vpop.f32.mrf.mxu1 }
  0xce   :  { %v525_v36 = vadd.f32 %v524_v27, %v512_v34 }
  0xd0   :  { %v2555_v37 = vadd.f32 %v537_v31, %v525_v36 }
  0xd1   :  { %v500_v38 = vpop.f32.mrf.mxu2 }
 0x107   :  { %v676_v39 = vpop.f32.mrf.mxu2 }
 0x108   :  { %v677_v41 = vadd.f32 %v676_v39, %v2555_v37 }
 0x10a   :  { %v742_v42 = vadd.f32 %v739_v40, %v677_v41 }
 0x10c   :  { %2247 = vtanh.f32 %v742_v42  ;;  %v2140_v44 = vmul.f32 -1.442695, %v742_v42 }
 0x10e   :  { %2249 = vpow2.f32 %v2140_v44 }
 0x10f   :  { %v678_v20 = vpop.f32.mrf.mxu2 }
 0x110   :  { %v679_v21 = vadd.f32 %v678_v20, %v2555_v37 }
 0x112   :  { %v2248_v43 = vpop.eup %2247 }
 0x113   :  { %765 = vrot.lane.b32.xlu1 %v2248_v43, %s2406_s18 }
 0x114   :  { %v2250_v45 = vpop.eup %2249 }
 0x115   :  { %v746_v46 = vadd.f32 1.0, %v2250_v45 }
 0x117   :  { %2251 = vrcp.f32 %v746_v46  ;;  %v758_v52 = vand.u32 2147483648, %v746_v46  ;;  %vm752_vm4 = vweird.f32 %v746_v46  ;;  %v756_v53 = vand.u32 2147483647, %v746_v46 }
 0x119   :  { %v759_v56 = vor.u32 1.1754944e-38, %v758_v52  ;;  %vm757_vm6 = vcmp.eq.f32.partialorder %v756_v53, 8.507059e+37 }
 0x11d   :  { %v2252_v47 = vpop.eup %2251 }
 0x11e   :  { %v748_v48 = vmul.f32 %v2252_v47, %v746_v46  ;;  %vm753_vm3 = vweird.f32 %v2252_v47 }
 0x11f   :  { %vm754_vm5 = vmor %vm752_vm4, %vm753_vm3 }
 0x120   :  { %v749_v49 = vsub.f32 1.0, %v748_v48 }
 0x122   :  { %v750_v50 = vmul.f32 %v2252_v47, %v749_v49 }
 0x124   :  { %v751_v51 = vadd.f32 %v2252_v47, %v750_v50 }
 0x126   :  { %v755_v54 = vsel %vm754_vm5, %v2252_v47, %v751_v51 }
 0x127   :  { %v760_v58 = vsel %vm757_vm6, %v759_v56, %v755_v54 }
 0x128   :  { %v763_v60 = vmul.f32 0.0, %v760_v58 }
 0x185   :  { %v766_v57 = vpop.permute.xlu1 %765 }
 0x186   :  { %v768_v59 = vmul.f32 %v766_v57, %v760_v58 }
 0x188   :  { %770 = vrot.lane.b32.xlu1 %v768_v59, %s2411_s2 }
 0x1fa   :  { %v771_v61 = vpop.permute.xlu1 %770 }
 0x1fb   :  { %v2560_v62 = vadd.f32 %v771_v61, %v763_v60 }
 0x1fd   :  { %2253 = vtanh.f32 %v2560_v62 }
 0x203   :  { %v2254_v63 = vpop.eup %2253 }
 0x204   :  { %776 = vrot.lane.b32.xlu2 %v2254_v63, %s2406_s18 }
 0x25e   :  { %v777_v7 = vpop.permute.xlu2 %776 }
 0x25f   :  { %v779_v8 = vmul.f32 %v777_v7, %v760_v58  ;;  %v543_v58 = vld [vmem:[%s2978_s3 + $0x10] sm:$0xff]  ;;  %v544_v7 = vld [vmem:[%s2978_s3 + $0x18] sm:$0xff] }
 0x261   :  { %781 = vrot.lane.b32.xlu2 %v779_v8, %s2411_s2 }
 0x2bb   :  { %v782_v12 = vpop.permute.xlu2 %781 }
 0x2bc   :  { %v784_v14 = vsel %vm718_vm7, %v782_v12, 0.0 }
 0x2bd   :  { %2141 = vmatmul.msk.f32.vlgmr.msra.gmra.mxu3 %vm788_vm8, %v784_v14 }
 0x2be   :  { %935 = vmatpush.msra.mxu3 %v2567_v0 }
 0x2c0   :  { %936 = vmatpush.msra.mxu3 %v2572_v1 }
 0x2c2   :  { %937 = vmatpush.msra.mxu3 %v2579_v2 }
 0x2c4   :  { %938 = vmatpush.msra.mxu3 %v2586_v3 }
 0x2c5   :  { %2143 = vmatmul.msk.f32.vlgmr.msrb.gmra.mxu3 %vm718_vm7, %v782_v12 }
 0x2c6   :  { %939 = vmatpush.msra.mxu3 %v2593_v4 }
 0x2c8   :  { %940 = vmatpush.msra.mxu3 %v2600_v5 }
 0x2ca   :  { %941 = vmatpush.msra.mxu3 %v2607_v6 }
 0x2cc   :  { %942 = vmatpush.msra.mxu3 %v2617_v10 }
 0x2ce   :  { %1071 = vmatpush.msrb.mxu3 %v2567_v0 }
 0x2d0   :  { %1072 = vmatpush.msrb.mxu3 %v2572_v1 }
 0x2d2   :  { %1073 = vmatpush.msrb.mxu3 %v2579_v2 }
 0x2d4   :  { %1074 = vmatpush.msrb.mxu3 %v2586_v3 }
 0x2d6   :  { %1075 = vmatpush.msrb.mxu3 %v2593_v4 }
 0x2d8   :  { %1076 = vmatpush.msrb.mxu3 %v2600_v5 }
 0x2da   :  { %1077 = vmatpush.msrb.mxu3 %v2607_v6 }
 0x2dc   :  { %1078 = vmatpush.msrb.mxu3 %v2617_v10 }
 0x340   :  { %v809_v16 = vpop.f32.mrf.mxu3 }
 0x341   :  { %v810_v18 = vadd.f32 %v2647_v15, %v809_v16 }
 0x343   :  { %2255 = vtanh.f32 %v810_v18  ;;  %v2142_v26 = vmul.f32 -1.442695, %v810_v18 }
 0x348   :  { %v875_v22 = vpop.f32.mrf.mxu3 }
 0x349   :  { %v2256_v23 = vpop.eup %2255  ;;  %v878_v24 = vadd.f32 %v875_v22, %v679_v21 }
 0x34a   :  { %834 = vrot.lane.b32.xlu0 %v2256_v23, %s2406_s18 }
 0x34b   :  { %2257 = vtanh.f32 %v878_v24  ;;  %v2144_v27 = vmul.f32 -1.442695, %v878_v24 }
 0x34c   :  { %2259 = vpow2.f32 %v2142_v26 }
 0x34d   :  { %2261 = vpow2.f32 %v2144_v27 }
 0x351   :  { %v2258_v25 = vpop.eup %2257 }
 0x352   :  { %901 = vrot.lane.b32.xlu1 %v2258_v25, %s2406_s18  ;;  %v2260_v28 = vpop.eup %2259 }
 0x353   :  { %v815_v29 = vadd.f32 1.0, %v2260_v28  ;;  %v2262_v30 = vpop.eup %2261 }
 0x354   :  { %v882_v31 = vadd.f32 1.0, %v2262_v30 }
 0x355   :  { %2263 = vrcp.f32 %v815_v29  ;;  %v827_v41 = vand.u32 2147483648, %v815_v29  ;;  %vm821_vm10 = vweird.f32 %v815_v29  ;;  %v825_v42 = vand.u32 2147483647, %v815_v29 }
 0x356   :  { %2265 = vrcp.f32 %v882_v31  ;;  %v894_v50 = vand.u32 2147483648, %v882_v31  ;;  %vm888_vm14 = vweird.f32 %v882_v31  ;;  %v892_v51 = vand.u32 2147483647, %v882_v31 }
 0x357   :  { %v828_v45 = vor.u32 1.1754944e-38, %v827_v41  ;;  %vm826_vm12 = vcmp.eq.f32.partialorder %v825_v42, 8.507059e+37 }
 0x358   :  { %v895_v53 = vor.u32 1.1754944e-38, %v894_v50  ;;  %vm893_vm0 = vcmp.eq.f32.partialorder %v892_v51, 8.507059e+37 }
 0x35b   :  { %v2264_v32 = vpop.eup %2263 }
 0x35c   :  { %v817_v33 = vmul.f32 %v2264_v32, %v815_v29  ;;  %v2266_v35 = vpop.eup %2265  ;;  %vm822_vm9 = vweird.f32 %v2264_v32 }
 0x35d   :  { %v884_v38 = vmul.f32 %v2266_v35, %v882_v31  ;;  %vm823_vm11 = vmor %vm821_vm10, %vm822_vm9  ;;  %vm889_vm13 = vweird.f32 %v2266_v35 }
 0x35e   :  { %v818_v34 = vsub.f32 1.0, %v817_v33  ;;  %vm890_vm15 = vmor %vm888_vm14, %vm889_vm13 }
 0x35f   :  { %v885_v40 = vsub.f32 1.0, %v884_v38 }
 0x360   :  { %v819_v36 = vmul.f32 %v2264_v32, %v818_v34 }
 0x361   :  { %v886_v44 = vmul.f32 %v2266_v35, %v885_v40 }
 0x362   :  { %v820_v39 = vadd.f32 %v2264_v32, %v819_v36 }
 0x363   :  { %v887_v49 = vadd.f32 %v2266_v35, %v886_v44 }
 0x364   :  { %v824_v43 = vsel %vm823_vm11, %v2264_v32, %v820_v39 }
 0x365   :  { %v829_v47 = vsel %vm826_vm12, %v828_v45, %v824_v43  ;;  %v891_v52 = vsel %vm890_vm15, %v2266_v35, %v887_v49 }
 0x366   :  { %v896_v56 = vsel %vm893_vm0, %v895_v53, %v891_v52  ;;  %v832_v59 = vmul.f32 0.0, %v829_v47 }
 0x367   :  { %v899_v8 = vmul.f32 %v896_v56, %v2560_v62 }
 0x3bc   :  { %v835_v46 = vpop.permute.xlu0 %834 }
 0x3bd   :  { %v837_v48 = vmul.f32 %v835_v46, %v829_v47 }
 0x3bf   :  { %839 = vrot.lane.b32.xlu2 %v837_v48, %s2411_s2 }
 0x3c4   :  { %v902_v54 = vpop.permute.xlu1 %901 }
 0x3c5   :  { %v904_v57 = vmul.f32 %v902_v54, %v896_v56 }
 0x3c7   :  { %906 = vrot.lane.b32.xlu0 %v904_v57, %s2411_s2 }
 0x3cf   :  { %558 = vperm.xlu0 %2242, %v543_v58  }
 0x419   :  { %v840_v60 = vpop.permute.xlu2 %839 }
 0x41a   :  { %v2658_v61 = vadd.f32 %v840_v60, %v832_v59 }
 0x41c   :  { %2267 = vtanh.f32 %v2658_v61 }
 0x422   :  { %v2268_v63 = vpop.eup %2267 }
 0x423   :  { %845 = vrot.lane.b32.xlu1 %v2268_v63, %s2406_s18 }
 0x42b   :  { %561 = vperm.xlu1 %2243, %v544_v7  }
 0x439   :  { %v907_v12 = vpop.permute.xlu0 %906 }
 0x43a   :  { %v2666_v14 = vadd.f32 %v907_v12, %v899_v8 }
 0x43c   :  { %2269 = vtanh.f32 %v2666_v14 }
 0x441   :  { %v559_v21 = vpop.permute.xlu0 %558 }
 0x442   :  { %v2270_v16 = vpop.eup %2269  ;;  %vm577_vm1 = vcmp.eq.s32.totalorder %v559_v21, %v2547_v17 }
 0x443   :  { %912 = vrot.lane.b32.xlu2 %v2270_v16, %s2406_s18 }
 0x495   :  { %v846_v18 = vpop.permute.xlu1 %845 }
 0x496   :  { %v2670_v20 = vmul.f32 %v846_v18, %v829_v47 }
 0x498   :  { %920 = vrot.lane.b32.xlu0 %v2670_v20, %s2406_s18 }
 0x49d   :  { %v913_v22 = vpop.permute.xlu2 %912  ;;  %v562_v23 = vpop.permute.xlu1 %561 }
 0x49e   :  { %v915_v62 = vmul.f32 %v913_v22, %v896_v56  ;;  %vm578_vm2 = vcmp.eq.s32.totalorder %v562_v23, %v2547_v17 }
 0x49f   :  { %vm2134_vm3 = vmpackc.low %vm578_vm2, %vm577_vm1 }
 0x4a0   :  { %917 = vrot.lane.b32.xlu2 %v915_v62, %s2411_s2  ;;  %2135 = vmatmul.msk.bf16.gmra.mxu2 %vm2134_vm3, %v2410_v19 }
 0x4fa   :  { %v918_v24 = vpop.permute.xlu2 %917 }
 0x4fb   :  { %2147 = vmatmul.msk.f32.vlgmr.msra.gmra.mxu1 %vm718_vm7, %v918_v24 }
 0x4fc   :  { %1479 = vmatpush.msra.mxu1 %v2567_v0 }
 0x4fe   :  { %1480 = vmatpush.msra.mxu1 %v2572_v1 }
 0x500   :  { %1481 = vmatpush.msra.mxu1 %v2579_v2 }
 0x502   :  { %1482 = vmatpush.msra.mxu1 %v2586_v3 }
 0x504   :  { %1483 = vmatpush.msra.mxu1 %v2593_v4 }
 0x506   :  { %1484 = vmatpush.msra.mxu1 %v2600_v5 }
 0x508   :  { %1485 = vmatpush.msra.mxu1 %v2607_v6 }
 0x50a   :  { %v921_v25 = vpop.permute.xlu0 %920  ;;  %1486 = vmatpush.msra.mxu1 %v2617_v10 }
 0x50b   :  { %v923_v26 = vsel %vm718_vm7, %v918_v24, %v921_v25 }
 0x50c   :  { %2145 = vmatmul.msk.f32.vlgmr.msra.gmra.mxu3 %vm788_vm8, %v923_v26 }
 0x50d   :  { %1343 = vmatpush.msra.mxu3 %v2567_v0 }
 0x50f   :  { %1344 = vmatpush.msra.mxu3 %v2572_v1 }
 0x511   :  { %1345 = vmatpush.msra.mxu3 %v2579_v2 }
 0x513   :  { %1346 = vmatpush.msra.mxu3 %v2586_v3 }
 0x515   :  { %1347 = vmatpush.msra.mxu3 %v2593_v4 }
 0x517   :  { %1348 = vmatpush.msra.mxu3 %v2600_v5 }
 0x519   :  { %1349 = vmatpush.msra.mxu3 %v2607_v6 }
 0x51b   :  { %1350 = vmatpush.msra.mxu3 %v2617_v10 }
 0x523   :  { %v681_v27 = vpop.f32.mrf.mxu2 }
 0x524   :  { %v682_v28 = vadd.f32 %v681_v27, %v2555_v37 }
 0x578   :  { %v1011_v29 = vpop.f32.mrf.mxu1 }
 0x579   :  { %v1014_v30 = vadd.f32 %v1011_v29, %v682_v28 }
 0x57b   :  { %2271 = vtanh.f32 %v1014_v30  ;;  %v2148_v35 = vmul.f32 -1.442695, %v1014_v30 }
 0x581   :  { %v2272_v31 = vpop.eup %2271 }
 0x582   :  { %1037 = vrot.lane.b32.xlu2 %v2272_v31, %s2406_s18 }
 0x58f   :  { %v944_v32 = vpop.f32.mrf.mxu3 }
 0x590   :  { %v945_v33 = vadd.f32 %v2647_v15, %v944_v32 }
 0x592   :  { %2273 = vtanh.f32 %v945_v33  ;;  %v2146_v51 = vmul.f32 -1.442695, %v945_v33  ;;  %v683_v33 = vpop.f32.mrf.mxu2 }
 0x593   :  { %2275 = vpow2.f32 %v2148_v35 }
 0x598   :  { %v2274_v34 = vpop.eup %2273 }
 0x599   :  { %969 = vrot.lane.b32.xlu1 %v2274_v34, %s2406_s18  ;;  %v2276_v36 = vpop.eup %2275  ;;  %v684_v34 = vadd.f32 %v683_v33, %v2555_v37 }
 0x59a   :  { %v1018_v38 = vadd.f32 1.0, %v2276_v36 }
 0x59c   :  { %2277 = vrcp.f32 %v1018_v38  ;;  %v1030_v44 = vand.u32 2147483648, %v1018_v38  ;;  %vm1024_vm5 = vweird.f32 %v1018_v38  ;;  %v1028_v45 = vand.u32 2147483647, %v1018_v38 }
 0x59d   :  { %2279 = vpow2.f32 %v2146_v51 }
 0x59e   :  { %v1031_v47 = vor.u32 1.1754944e-38, %v1030_v44  ;;  %vm1029_vm9 = vcmp.eq.f32.partialorder %v1028_v45, 8.507059e+37 }
 0x5a2   :  { %v2278_v39 = vpop.eup %2277 }
 0x5a3   :  { %v1020_v40 = vmul.f32 %v2278_v39, %v1018_v38  ;;  %vm1025_vm4 = vweird.f32 %v2278_v39  ;;  %v2280_v52 = vpop.eup %2279 }
 0x5a4   :  { %vm1026_vm6 = vmor %vm1024_vm5, %vm1025_vm4  ;;  %v950_v53 = vadd.f32 1.0, %v2280_v52 }
 0x5a5   :  { %v1021_v41 = vsub.f32 1.0, %v1020_v40 }
 0x5a6   :  { %2281 = vrcp.f32 %v950_v53  ;;  %v962_v60 = vand.u32 2147483648, %v950_v53  ;;  %vm956_vm11 = vweird.f32 %v950_v53  ;;  %v960_v63 = vand.u32 2147483647, %v950_v53 }
 0x5a7   :  { %v1022_v42 = vmul.f32 %v2278_v39, %v1021_v41 }
 0x5a8   :  { %v963_v8 = vor.u32 1.1754944e-38, %v962_v60  ;;  %vm961_vm13 = vcmp.eq.f32.partialorder %v960_v63, 8.507059e+37 }
 0x5a9   :  { %v1023_v43 = vadd.f32 %v2278_v39, %v1022_v42 }
 0x5ab   :  { %v1027_v46 = vsel %vm1026_vm6, %v2278_v39, %v1023_v43 }
 0x5ac   :  { %v1032_v49 = vsel %vm1029_vm9, %v1031_v47, %v1027_v46  ;;  %v2282_v54 = vpop.eup %2281 }
 0x5ad   :  { %v952_v56 = vmul.f32 %v2282_v54, %v950_v53  ;;  %vm957_vm10 = vweird.f32 %v2282_v54  ;;  %v1035_v21 = vmul.f32 %v1032_v49, %v2666_v14 }
 0x5ae   :  { %vm958_vm12 = vmor %vm956_vm11, %vm957_vm10 }
 0x5af   :  { %v953_v57 = vsub.f32 1.0, %v952_v56 }
 0x5b1   :  { %v954_v58 = vmul.f32 %v2282_v54, %v953_v57 }
 0x5b3   :  { %v955_v59 = vadd.f32 %v2282_v54, %v954_v58 }
 0x5b5   :  { %v959_v7 = vsel %vm958_vm12, %v2282_v54, %v955_v59 }
 0x5b6   :  { %v964_v12 = vsel %vm961_vm13, %v963_v8, %v959_v7 }
 0x5b7   :  { %v967_v24 = vmul.f32 %v964_v12, %v2658_v61 }
 0x5dc   :  { %v1038_v48 = vpop.permute.xlu2 %1037 }
 0x5dd   :  { %v1040_v50 = vmul.f32 %v1038_v48, %v1032_v49 }
 0x5df   :  { %1042 = vrot.lane.b32.xlu1 %v1040_v50, %s2411_s2 }
 0x60b   :  { %v970_v16 = vpop.permute.xlu1 %969 }
 0x60c   :  { %v972_v18 = vmul.f32 %v970_v16, %v964_v12 }
 0x60e   :  { %974 = vrot.lane.b32.xlu0 %v972_v18, %s2411_s2 }
 0x651   :  { %v1043_v22 = vpop.permute.xlu1 %1042 }
 0x652   :  { %v2704_v23 = vadd.f32 %v1043_v22, %v1035_v21 }
 0x654   :  { %2283 = vtanh.f32 %v2704_v23 }
 0x65a   :  { %v2284_v62 = vpop.eup %2283 }
 0x65b   :  { %1048 = vrot.lane.b32.xlu0 %v2284_v62, %s2406_s18 }
 0x680   :  { %v975_v25 = vpop.permute.xlu0 %974 }
 0x681   :  { %v2709_v26 = vadd.f32 %v975_v25, %v967_v24 }
 0x683   :  { %2285 = vtanh.f32 %v2709_v26 }
 0x689   :  { %v2286_v27 = vpop.eup %2285 }
 0x68a   :  { %980 = vrot.lane.b32.xlu2 %v2286_v27, %s2406_s18 }
 0x6cd   :  { %v1049_v28 = vpop.permute.xlu0 %1048 }
 0x6ce   :  { %v1051_v14 = vmul.f32 %v1049_v28, %v1032_v49  ;;  %v545_v28 = vld [vmem:[%s2978_s3 + $0x20] sm:$0xff] }
 0x6d0   :  { %1053 = vrot.lane.b32.xlu1 %v1051_v14, %s2411_s2 }
 0x6e4   :  { %v981_v29 = vpop.permute.xlu2 %980 }
 0x6e5   :  { %v2714_v30 = vmul.f32 %v981_v29, %v964_v12 }
 0x6e7   :  { %1056 = vrot.lane.b32.xlu2 %v2714_v30, %s2406_s18 }
 0x741   :  { %v1057_v31 = vpop.permute.xlu2 %1056 }
 0x742   :  { %v1054_v61 = vpop.permute.xlu1 %1053 }
 0x743   :  { %v1059_v32 = vsel %vm718_vm7, %v1054_v61, %v1057_v31  ;;  %2151 = vmatmul.msk.f32.vlgmr.msrb.gmra.mxu0 %vm718_vm7, %v1054_v61 }
 0x744   :  { %2149 = vmatmul.msk.f32.vlgmr.msrb.gmra.mxu3 %vm788_vm8, %v1059_v32  ;;  %1414 = vmatpush.msrb.mxu0 %v2490_v55  ;;  %v546_v32 = vld [vmem:[%s2978_s3 + $0x28] sm:$0xff] }
 0x745   :  { %1615 = vmatpush.msrb.mxu3 %v2567_v0 }
 0x746   :  { %1415 = vmatpush.msrb.mxu0 %v2516_v9 }
 0x747   :  { %1616 = vmatpush.msrb.mxu3 %v2572_v1 }
 0x748   :  { %1416 = vmatpush.msrb.mxu0 %v2524_v11 }
 0x749   :  { %1617 = vmatpush.msrb.mxu3 %v2579_v2 }
 0x74a   :  { %1417 = vmatpush.msrb.mxu0 %v2538_v13 }
 0x74b   :  { %1618 = vmatpush.msrb.mxu3 %v2586_v3 }
 0x74d   :  { %1619 = vmatpush.msrb.mxu3 %v2593_v4 }
 0x74f   :  { %1620 = vmatpush.msrb.mxu3 %v2600_v5 }
 0x751   :  { %1621 = vmatpush.msrb.mxu3 %v2607_v6 }
 0x753   :  { %1622 = vmatpush.msrb.mxu3 %v2617_v10 }
 0x7c0   :  { %v1147_v35 = vpop.f32.mrf.mxu0 }
 0x7c1   :  { %v1150_v36 = vadd.f32 %v1147_v35, %v684_v34 }
 0x7c3   :  { %2287 = vtanh.f32 %v1150_v36  ;;  %v2152_v42 = vmul.f32 -1.442695, %v1150_v36 }
 0x7c7   :  { %v1080_v38 = vpop.f32.mrf.mxu3 }
 0x7c8   :  { %v1081_v39 = vadd.f32 %v2647_v15, %v1080_v38 }
 0x7c9   :  { %v2288_v40 = vpop.eup %2287 }
 0x7ca   :  { %2289 = vtanh.f32 %v1081_v39  ;;  %1173 = vrot.lane.b32.xlu1 %v2288_v40, %s2406_s18  ;;  %v2150_v43 = vmul.f32 -1.442695, %v1081_v39 }
 0x7cb   :  { %2291 = vpow2.f32 %v2152_v42 }
 0x7cc   :  { %2293 = vpow2.f32 %v2150_v43 }
 0x7d0   :  { %v2290_v41 = vpop.eup %2289 }
 0x7d1   :  { %1105 = vrot.lane.b32.xlu0 %v2290_v41, %s2406_s18  ;;  %v2292_v44 = vpop.eup %2291 }
 0x7d2   :  { %v1154_v45 = vadd.f32 1.0, %v2292_v44  ;;  %v2294_v46 = vpop.eup %2293 }
 0x7d3   :  { %v1086_v47 = vadd.f32 1.0, %v2294_v46 }
 0x7d4   :  { %2295 = vrcp.f32 %v1154_v45  ;;  %v1166_v57 = vand.u32 2147483648, %v1154_v45  ;;  %vm1160_vm15 = vweird.f32 %v1154_v45  ;;  %v1164_v58 = vand.u32 2147483647, %v1154_v45 }
 0x7d5   :  { %2297 = vrcp.f32 %v1086_v47  ;;  %v1098_v18 = vand.u32 2147483648, %v1086_v47  ;;  %vm1092_vm3 = vweird.f32 %v1086_v47  ;;  %v1096_v21 = vand.u32 2147483647, %v1086_v47 }
 0x7d6   :  { %v1167_v63 = vor.u32 1.1754944e-38, %v1166_v57  ;;  %vm1165_vm1 = vcmp.eq.f32.partialorder %v1164_v58, 8.507059e+37 }
 0x7d7   :  { %v1099_v62 = vor.u32 1.1754944e-38, %v1098_v18  ;;  %vm1097_vm5 = vcmp.eq.f32.partialorder %v1096_v21, 8.507059e+37 }
 0x7da   :  { %v2296_v48 = vpop.eup %2295 }
 0x7db   :  { %v1156_v49 = vmul.f32 %v2296_v48, %v1154_v45  ;;  %v2298_v50 = vpop.eup %2297  ;;  %vm1161_vm14 = vweird.f32 %v2296_v48 }
 0x7dc   :  { %v1088_v52 = vmul.f32 %v2298_v50, %v1086_v47  ;;  %vm1162_vm0 = vmor %vm1160_vm15, %vm1161_vm14  ;;  %vm1093_vm2 = vweird.f32 %v2298_v50 }
 0x7dd   :  { %v1157_v51 = vsub.f32 1.0, %v1156_v49  ;;  %vm1094_vm4 = vmor %vm1092_vm3, %vm1093_vm2 }
 0x7de   :  { %v1089_v54 = vsub.f32 1.0, %v1088_v52 }
 0x7df   :  { %v1158_v53 = vmul.f32 %v2296_v48, %v1157_v51 }
 0x7e0   :  { %v1090_v59 = vmul.f32 %v2298_v50, %v1089_v54 }
 0x7e1   :  { %v1159_v56 = vadd.f32 %v2296_v48, %v1158_v53 }
 0x7e2   :  { %v1091_v12 = vadd.f32 %v2298_v50, %v1090_v59 }
 0x7e3   :  { %v1163_v60 = vsel %vm1162_vm0, %v2296_v48, %v1159_v56 }
 0x7e4   :  { %v1168_v8 = vsel %vm1165_vm1, %v1167_v63, %v1163_v60  ;;  %v1095_v22 = vsel %vm1094_vm4, %v2298_v50, %v1091_v12 }
 0x7e5   :  { %v1100_v25 = vsel %vm1097_vm5, %v1099_v62, %v1095_v22  ;;  %v1171_v33 = vmul.f32 %v1168_v8, %v2704_v23 }
 0x7e6   :  { %v1103_v14 = vmul.f32 %v1100_v25, %v2709_v26 }
 0x83c   :  { %v1174_v7 = vpop.permute.xlu1 %1173 }
 0x83d   :  { %v1176_v16 = vmul.f32 %v1174_v7, %v1168_v8 }
 0x83f   :  { %1178 = vrot.lane.b32.xlu0 %v1176_v16, %s2411_s2 }
 0x843   :  { %v1106_v24 = vpop.permute.xlu0 %1105 }
 0x844   :  { %v1108_v27 = vmul.f32 %v1106_v24, %v1100_v25 }
 0x846   :  { %1110 = vrot.lane.b32.xlu2 %v1108_v27, %s2411_s2 }
 0x847   :  { %564 = vperm.xlu0 %2242, %v545_v28  }
 0x8a0   :  { %v1111_v29 = vpop.permute.xlu2 %1110 }
 0x8a1   :  { %v2743_v31 = vadd.f32 %v1111_v29, %v1103_v14 }
 0x8a3   :  { %2299 = vtanh.f32 %v2743_v31 }
 0x8a9   :  { %v2300_v61 = vpop.eup %2299 }
 0x8aa   :  { %1116 = vrot.lane.b32.xlu1 %v2300_v61, %s2406_s18 }
 0x8b1   :  { %v1179_v34 = vpop.permute.xlu0 %1178 }
 0x8b2   :  { %v2751_v35 = vadd.f32 %v1179_v34, %v1171_v33  ;;  %567 = vperm.xlu1 %2243, %v546_v32  }
 0x8b4   :  { %2301 = vtanh.f32 %v2751_v35 }
 0x8b9   :  { %v565_v23 = vpop.permute.xlu0 %564 }
 0x8ba   :  { %v2302_v26 = vpop.eup %2301  ;;  %vm579_vm6 = vcmp.eq.s32.totalorder %v565_v23, %v2547_v17 }
 0x8bb   :  { %1184 = vrot.lane.b32.xlu2 %v2302_v26, %s2406_s18 }
 0x915   :  { %v1185_v36 = vpop.permute.xlu2 %1184 }
 0x916   :  { %v1187_v38 = vmul.f32 %v1185_v36, %v1168_v8 }
 0x918   :  { %1189 = vrot.lane.b32.xlu2 %v1187_v38, %s2411_s2 }
 0x91c   :  { %v1117_v39 = vpop.permute.xlu1 %1116 }
 0x91d   :  { %v2756_v40 = vmul.f32 %v1117_v39, %v1100_v25 }
 0x91f   :  { %1192 = vrot.lane.b32.xlu0 %v2756_v40, %s2406_s18 }
 0x924   :  { %v568_v41 = vpop.permute.xlu1 %567 }
 0x925   :  { %vm580_vm9 = vcmp.eq.s32.totalorder %v568_v41, %v2547_v17  ;;  %v2376_v41 = vld [vmem:[%s2980_s5 + $0x10] sm:$0xff] }
 0x926   :  { %vm2136_vm10 = vmpackc.low %vm580_vm9, %vm579_vm6 }
 0x927   :  { %2137 = vmatmul.msk.bf16.gmra.mxu2 %vm2136_vm10, %v2410_v19 }
 0x972   :  { %v1190_v42 = vpop.permute.xlu2 %1189 }
 0x973   :  { %2155 = vmatmul.msk.f32.vlgmr.msra.gmra.mxu0 %vm718_vm7, %v1190_v42 }
 0x974   :  { %1550 = vmatpush.msra.mxu0 %v2490_v55 }
 0x976   :  { %1551 = vmatpush.msra.mxu0 %v2516_v9 }
 0x978   :  { %1552 = vmatpush.msra.mxu0 %v2524_v11 }
 0x97a   :  { %1553 = vmatpush.msra.mxu0 %v2538_v13 }
 0x991   :  { %v1193_v43 = vpop.permute.xlu0 %1192 }
 0x992   :  { %v1195_v44 = vsel %vm718_vm7, %v1190_v42, %v1193_v43  ;;  %v2377_v42 = vld [vmem:[%s2980_s5 + $0x8] sm:$0xff] }
 0x993   :  { %2153 = vmatmul.msk.f32.vlgmr.msrb.gmra.mxu1 %vm788_vm8, %v1195_v44 }
 0x994   :  { %1751 = vmatpush.msrb.mxu1 %v2567_v0 }
 0x996   :  { %1752 = vmatpush.msrb.mxu1 %v2572_v1 }
 0x998   :  { %1753 = vmatpush.msrb.mxu1 %v2579_v2 }
 0x99a   :  { %1754 = vmatpush.msrb.mxu1 %v2586_v3 }
 0x99c   :  { %1755 = vmatpush.msrb.mxu1 %v2593_v4 }
 0x99e   :  { %1756 = vmatpush.msrb.mxu1 %v2600_v5 }
 0x9a0   :  { %1757 = vmatpush.msrb.mxu1 %v2607_v6 }
 0x9a2   :  { %1758 = vmatpush.msrb.mxu1 %v2617_v10 }
 0x9aa   :  { %v686_v55 = vpop.f32.mrf.mxu2 }
 0x9ab   :  { %v687_v9 = vadd.f32 %v686_v55, %v2555_v37 }
 0x9b2   :  { %v688_v55 = vpop.f32.mrf.mxu2 }
 0x9f0   :  { %v1283_v11 = vpop.f32.mrf.mxu0 }
 0x9f1   :  { %v1286_v45 = vadd.f32 %v1283_v11, %v687_v9  ;;  %v689_v9 = vadd.f32 %v688_v55, %v2555_v37 }
 0x9f3   :  { %2303 = vtanh.f32 %v1286_v45  ;;  %v2156_v4 = vmul.f32 -1.442695, %v1286_v45 }
 0x9f9   :  { %v2304_v0 = vpop.eup %2303 }
 0x9fa   :  { %1309 = vrot.lane.b32.xlu2 %v2304_v0, %s2406_s18 }
 0xa10   :  { %v1216_v1 = vpop.f32.mrf.mxu1 }
 0xa11   :  { %v1217_v2 = vadd.f32 %v2647_v15, %v1216_v1 }
 0xa13   :  { %2305 = vtanh.f32 %v1217_v2  ;;  %v2154_v58 = vmul.f32 -1.442695, %v1217_v2 }
 0xa14   :  { %2307 = vpow2.f32 %v2156_v4 }
 0xa19   :  { %v2306_v3 = vpop.eup %2305 }
 0xa1a   :  { %1241 = vrot.lane.b32.xlu1 %v2306_v3, %s2406_s18  ;;  %v2308_v5 = vpop.eup %2307 }
 0xa1b   :  { %v1290_v6 = vadd.f32 1.0, %v2308_v5 }
 0xa1d   :  { %2309 = vrcp.f32 %v1290_v6  ;;  %v1302_v50 = vand.u32 2147483648, %v1290_v6  ;;  %vm1296_vm12 = vweird.f32 %v1290_v6  ;;  %v1300_v51 = vand.u32 2147483647, %v1290_v6 }
 0xa1e   :  { %2311 = vpow2.f32 %v2154_v58 }
 0xa1f   :  { %v1303_v53 = vor.u32 1.1754944e-38, %v1302_v50  ;;  %vm1301_vm14 = vcmp.eq.f32.partialorder %v1300_v51, 8.507059e+37 }
 0xa23   :  { %v2310_v10 = vpop.eup %2309 }
 0xa24   :  { %v1292_v46 = vmul.f32 %v2310_v10, %v1290_v6  ;;  %vm1297_vm11 = vweird.f32 %v2310_v10  ;;  %v2312_v59 = vpop.eup %2311 }
 0xa25   :  { %vm1298_vm13 = vmor %vm1296_vm12, %vm1297_vm11  ;;  %v1222_v60 = vadd.f32 1.0, %v2312_v59 }
 0xa26   :  { %v1293_v47 = vsub.f32 1.0, %v1292_v46 }
 0xa27   :  { %2313 = vrcp.f32 %v1222_v60  ;;  %v1234_v18 = vand.u32 2147483648, %v1222_v60  ;;  %vm1228_vm0 = vweird.f32 %v1222_v60  ;;  %v1232_v21 = vand.u32 2147483647, %v1222_v60 }
 0xa28   :  { %v1294_v48 = vmul.f32 %v2310_v10, %v1293_v47 }
 0xa29   :  { %v1235_v62 = vor.u32 1.1754944e-38, %v1234_v18  ;;  %vm1233_vm2 = vcmp.eq.f32.partialorder %v1232_v21, 8.507059e+37 }
 0xa2a   :  { %v1295_v49 = vadd.f32 %v2310_v10, %v1294_v48 }
 0xa2c   :  { %v1299_v52 = vsel %vm1298_vm13, %v2310_v10, %v1295_v49 }
 0xa2d   :  { %v1304_v56 = vsel %vm1301_vm14, %v1303_v53, %v1299_v52  ;;  %v2314_v63 = vpop.eup %2313 }
 0xa2e   :  { %v1224_v7 = vmul.f32 %v2314_v63, %v1222_v60  ;;  %vm1229_vm15 = vweird.f32 %v2314_v63  ;;  %v1307_v28 = vmul.f32 %v1304_v56, %v2751_v35 }
 0xa2f   :  { %vm1230_vm1 = vmor %vm1228_vm0, %vm1229_vm15 }
 0xa30   :  { %v1225_v8 = vsub.f32 1.0, %v1224_v7 }
 0xa32   :  { %v1226_v12 = vmul.f32 %v2314_v63, %v1225_v8 }
 0xa34   :  { %v1227_v16 = vadd.f32 %v2314_v63, %v1226_v12  ;;  %v547_v12 = vld [vmem:[%s2978_s3 + $0x30] sm:$0xff] }
 0xa36   :  { %v1231_v22 = vsel %vm1230_vm1, %v2314_v63, %v1227_v16 }
 0xa37   :  { %v1236_v24 = vsel %vm1233_vm2, %v1235_v62, %v1231_v22 }
 0xa38   :  { %v1239_v32 = vmul.f32 %v1236_v24, %v2743_v31  ;;  %v2375_v31 = vld [vmem:[%s2980_s5 + $0x18] sm:$0xff] }
 0xa54   :  { %v1310_v54 = vpop.permute.xlu2 %1309 }
 0xa55   :  { %v1312_v57 = vmul.f32 %v1310_v54, %v1304_v56 }
 0xa57   :  { %1314 = vrot.lane.b32.xlu1 %v1312_v57, %s2411_s2 }
 0xa8c   :  { %v1242_v25 = vpop.permute.xlu1 %1241 }
 0xa8d   :  { %v1244_v27 = vmul.f32 %v1242_v25, %v1236_v24 }
 0xa8f   :  { %1246 = vrot.lane.b32.xlu0 %v1244_v27, %s2411_s2 }
 0xac9   :  { %v1315_v14 = vpop.permute.xlu1 %1314 }
 0xaca   :  { %v2785_v29 = vadd.f32 %v1315_v14, %v1307_v28 }
 0xacc   :  { %2315 = vtanh.f32 %v2785_v29 }
 0xad2   :  { %v2316_v61 = vpop.eup %2315 }
 0xad3   :  { %1320 = vrot.lane.b32.xlu0 %v2316_v61, %s2406_s18 }
 0xb01   :  { %v1247_v33 = vpop.permute.xlu0 %1246 }
 0xb02   :  { %v2790_v34 = vadd.f32 %v1247_v33, %v1239_v32 }
 0xb04   :  { %2317 = vtanh.f32 %v2790_v34 }
 0xb0a   :  { %v2318_v26 = vpop.eup %2317 }
 0xb0b   :  { %1252 = vrot.lane.b32.xlu2 %v2318_v26, %s2406_s18 }
 0xb45   :  { %v1321_v36 = vpop.permute.xlu0 %1320 }
 0xb46   :  { %v1323_v35 = vmul.f32 %v1321_v36, %v1304_v56 }
 0xb48   :  { %1325 = vrot.lane.b32.xlu1 %v1323_v35, %s2411_s2  ;;  %v548_v35 = vld [vmem:[%s2978_s3 + $0x38] sm:$0xff] }
 0xb65   :  { %v1253_v38 = vpop.permute.xlu2 %1252 }
 0xb66   :  { %v2795_v39 = vmul.f32 %v1253_v38, %v1236_v24 }
 0xb68   :  { %1328 = vrot.lane.b32.xlu2 %v2795_v39, %s2406_s18 }
 0xbba   :  { %v1326_v23 = vpop.permute.xlu1 %1325 }
 0xbbb   :  { %2159 = vmatmul.msk.f32.vlgmr.msrb.gmra.mxu0 %vm718_vm7, %v1326_v23 }
 0xbbc   :  { %1686 = vmatpush.msrb.mxu0 %v2375_v31 }
 0xbbe   :  { %1687 = vmatpush.msrb.mxu0 %v2376_v41 }
 0xbc0   :  { %1688 = vmatpush.msrb.mxu0 %v2377_v42 }
 0xbc2   :  { %v1329_v43 = vpop.permute.xlu2 %1328  ;;  %1689 = vmatpush.msrb.mxu0 %v2538_v13 }
 0xbc3   :  { %v1331_v44 = vsel %vm718_vm7, %v1326_v23, %v1329_v43 }
 0xbc4   :  { %2157 = vmatmul.msk.f32.vlgmr.msra.gmra.mxu3 %vm788_vm8, %v1331_v44 }
 0xc38   :  { %v1419_v11 = vpop.f32.mrf.mxu0 }
 0xc39   :  { %v1422_v45 = vadd.f32 %v1419_v11, %v689_v9 }
 0xc3b   :  { %2319 = vtanh.f32 %v1422_v45  ;;  %v2160_v13 = vmul.f32 -1.442695, %v1422_v45 }
 0xc41   :  { %v2320_v0 = vpop.eup %2319 }
 0xc42   :  { %1445 = vrot.lane.b32.xlu1 %v2320_v0, %s2406_s18 }
 0xc47   :  { %v1352_v1 = vpop.f32.mrf.mxu3 }
 0xc48   :  { %v1353_v2 = vadd.f32 %v2647_v15, %v1352_v1 }
 0xc4a   :  { %2321 = vtanh.f32 %v1353_v2  ;;  %v2158_v6 = vmul.f32 -1.442695, %v1353_v2 }
 0xc4b   :  { %2323 = vpow2.f32 %v2160_v13 }
 0xc50   :  { %v2322_v3 = vpop.eup %2321 }
 0xc51   :  { %1377 = vrot.lane.b32.xlu0 %v2322_v3, %s2406_s18  ;;  %v2324_v4 = vpop.eup %2323 }
 0xc52   :  { %v1426_v5 = vadd.f32 1.0, %v2324_v4 }
 0xc54   :  { %2325 = vrcp.f32 %v1426_v5  ;;  %v1438_v53 = vand.u32 2147483648, %v1426_v5  ;;  %vm1432_vm4 = vweird.f32 %v1426_v5  ;;  %v1436_v54 = vand.u32 2147483647, %v1426_v5 }
 0xc55   :  { %2327 = vpow2.f32 %v2158_v6 }
 0xc56   :  { %v1439_v58 = vor.u32 1.1754944e-38, %v1438_v53  ;;  %vm1437_vm6 = vcmp.eq.f32.partialorder %v1436_v54, 8.507059e+37 }
 0xc5a   :  { %v2326_v10 = vpop.eup %2325 }
 0xc5b   :  { %v2328_v46 = vpop.eup %2327  ;;  %v1428_v47 = vmul.f32 %v2326_v10, %v1426_v5  ;;  %vm1433_vm3 = vweird.f32 %v2326_v10 }
 0xc5c   :  { %v1358_v48 = vadd.f32 1.0, %v2328_v46  ;;  %vm1434_vm5 = vmor %vm1432_vm4, %vm1433_vm3 }
 0xc5d   :  { %v1429_v49 = vsub.f32 1.0, %v1428_v47 }
 0xc5e   :  { %2329 = vrcp.f32 %v1358_v48  ;;  %v1370_v18 = vand.u32 2147483648, %v1358_v48  ;;  %vm1364_vm10 = vweird.f32 %v1358_v48  ;;  %v1368_v21 = vand.u32 2147483647, %v1358_v48 }
 0xc5f   :  { %v1430_v50 = vmul.f32 %v2326_v10, %v1429_v49 }
 0xc60   :  { %v1371_v62 = vor.u32 1.1754944e-38, %v1370_v18  ;;  %vm1369_vm12 = vcmp.eq.f32.partialorder %v1368_v21, 8.507059e+37 }
 0xc61   :  { %v1431_v52 = vadd.f32 %v2326_v10, %v1430_v50 }
 0xc63   :  { %v1435_v57 = vsel %vm1434_vm5, %v2326_v10, %v1431_v52 }
 0xc64   :  { %v2330_v51 = vpop.eup %2329  ;;  %v1440_v60 = vsel %vm1437_vm6, %v1439_v58, %v1435_v57 }
 0xc65   :  { %v1360_v56 = vmul.f32 %v2330_v51, %v1358_v48  ;;  %vm1365_vm9 = vweird.f32 %v2330_v51  ;;  %v1443_v32 = vmul.f32 %v1440_v60, %v2785_v29 }
 0xc66   :  { %vm1366_vm11 = vmor %vm1364_vm10, %vm1365_vm9 }
 0xc67   :  { %v1361_v63 = vsub.f32 1.0, %v1360_v56 }
 0xc69   :  { %v1362_v8 = vmul.f32 %v2330_v51, %v1361_v63 }
 0xc6b   :  { %v1363_v16 = vadd.f32 %v2330_v51, %v1362_v8 }
 0xc6d   :  { %v1367_v22 = vsel %vm1366_vm11, %v2330_v51, %v1363_v16 }
 0xc6e   :  { %v1372_v25 = vsel %vm1369_vm12, %v1371_v62, %v1367_v22 }
 0xc6f   :  { %v1375_v28 = vmul.f32 %v1372_v25, %v2790_v34 }
 0xcb4   :  { %v1446_v59 = vpop.permute.xlu1 %1445 }
 0xcb5   :  { %v1448_v7 = vmul.f32 %v1446_v59, %v1440_v60 }
 0xcb7   :  { %1450 = vrot.lane.b32.xlu0 %v1448_v7, %s2411_s2 }
 0xcbf   :  { %570 = vperm.xlu0 %2242, %v547_v12  }
 0xcc3   :  { %v1378_v24 = vpop.permute.xlu0 %1377 }
 0xcc4   :  { %v1380_v27 = vmul.f32 %v1378_v24, %v1372_v25 }
 0xcc6   :  { %1382 = vrot.lane.b32.xlu2 %v1380_v27, %s2411_s2 }
 0xd20   :  { %v1383_v14 = vpop.permute.xlu2 %1382 }
 0xd21   :  { %v2822_v61 = vadd.f32 %v1383_v14, %v1375_v28 }
 0xd23   :  { %2331 = vtanh.f32 %v2822_v61 }
 0xd29   :  { %v2332_v33 = vpop.eup %2331  ;;  %v1451_v26 = vpop.permute.xlu0 %1450 }
 0xd2a   :  { %v2826_v36 = vadd.f32 %v1451_v26, %v1443_v32  ;;  %1388 = vrot.lane.b32.xlu1 %v2332_v33, %s2406_s18 }
 0xd2c   :  { %2333 = vtanh.f32 %v2826_v36 }
 0xd31   :  { %v571_v41 = vpop.permute.xlu0 %570 }
 0xd32   :  { %v2334_v34 = vpop.eup %2333  ;;  %573 = vperm.xlu1 %2243, %v548_v35   ;;  %vm581_vm13 = vcmp.eq.s32.totalorder %v571_v41, %v2547_v17 }
 0xd33   :  { %1456 = vrot.lane.b32.xlu2 %v2334_v34, %s2406_s18 }
 0xd8d   :  { %v1457_v38 = vpop.permute.xlu2 %1456 }
 0xd8e   :  { %v1459_v23 = vmul.f32 %v1457_v38, %v1440_v60 }
 0xd90   :  { %1461 = vrot.lane.b32.xlu2 %v1459_v23, %s2411_s2 }
 0xd9c   :  { %v1389_v29 = vpop.permute.xlu1 %1388 }
 0xd9d   :  { %v2835_v31 = vmul.f32 %v1389_v29, %v1372_v25 }
 0xd9f   :  { %1464 = vrot.lane.b32.xlu0 %v2835_v31, %s2406_s18 }
 0xda4   :  { %v574_v42 = vpop.permute.xlu1 %573 }
 0xda5   :  { %vm582_vm14 = vcmp.eq.s32.totalorder %v574_v42, %v2547_v17 }
 0xda6   :  { %vm2138_vm15 = vmpackc.low %vm582_vm14, %vm581_vm13 }
 0xda7   :  { %2139 = vmatmul.msk.bf16.gmra.mxu2 %vm2138_vm15, %v2410_v19 }
 0xdea   :  { %v1462_v43 = vpop.permute.xlu2 %1461 }
 0xdeb   :  { %2163 = vmatmul.msk.f32.vlgmr.msra.gmra.mxu0 %vm718_vm7, %v1462_v43 }
 0xe11   :  { %v1465_v44 = vpop.permute.xlu0 %1464 }
 0xe12   :  { %v1467_v55 = vsel %vm718_vm7, %v1462_v43, %v1465_v44 }
 0xe13   :  { %2161 = vmatmul.msk.f32.vlgmr.msra.gmra.mxu1 %vm788_vm8, %v1467_v55 }
 0xe2a   :  { %v691_v9 = vpop.f32.mrf.mxu2 }
 0xe2b   :  { %v692_v11 = vadd.f32 %v691_v9, %v2555_v37 }
 0xe32   :  { %v693_v41 = vpop.f32.mrf.mxu2 }
 0xe33   :  { %v694_v42 = vadd.f32 %v693_v41, %v2555_v37 }
 0xe68   :  { %v1555_v45 = vpop.f32.mrf.mxu0 }
 0xe69   :  { %v1558_v0 = vadd.f32 %v1555_v45, %v692_v11  ;;  %v2874_v11 = vld [vmem:[%s2982_s7] ss:$0 sm:$0xff] }
 0xe6b   :  { %2335 = vtanh.f32 %v1558_v0  ;;  %v2164_v3 = vmul.f32 -1.442695, %v1558_v0 }
 0xe71   :  { %v2336_v1 = vpop.eup %2335 }
 0xe72   :  { %1581 = vrot.lane.b32.xlu2 %v2336_v1, %s2406_s18 }
 0xe90   :  { %v1488_v17 = vpop.f32.mrf.mxu1 }
 0xe91   :  { %v1489_v19 = vadd.f32 %v2647_v15, %v1488_v17 }
 0xe93   :  { %2337 = vtanh.f32 %v1489_v19  ;;  %v2162_v54 = vmul.f32 -1.442695, %v1489_v19 }
 0xe94   :  { %2339 = vpow2.f32 %v2164_v3 }
 0xe99   :  { %v2338_v2 = vpop.eup %2337 }
 0xe9a   :  { %1513 = vrot.lane.b32.xlu1 %v2338_v2, %s2406_s18  ;;  %v2340_v13 = vpop.eup %2339 }
 0xe9b   :  { %v1562_v4 = vadd.f32 1.0, %v2340_v13 }
 0xe9d   :  { %2341 = vrcp.f32 %v1562_v4  ;;  %v1574_v48 = vand.u32 2147483648, %v1562_v4  ;;  %vm1568_vm1 = vweird.f32 %v1562_v4  ;;  %v1572_v49 = vand.u32 2147483647, %v1562_v4 }
 0xe9e   :  { %2343 = vpow2.f32 %v2162_v54 }
 0xe9f   :  { %v1575_v50 = vor.u32 1.1754944e-38, %v1574_v48  ;;  %vm1573_vm3 = vcmp.eq.f32.partialorder %v1572_v49, 8.507059e+37 }
 0xea3   :  { %v2342_v5 = vpop.eup %2341 }
 0xea4   :  { %v1564_v6 = vmul.f32 %v2342_v5, %v1562_v4  ;;  %vm1569_vm0 = vweird.f32 %v2342_v5  ;;  %v2344_v56 = vpop.eup %2343 }
 0xea5   :  { %vm1570_vm2 = vmor %vm1568_vm1, %vm1569_vm0  ;;  %v1494_v57 = vadd.f32 1.0, %v2344_v56 }
 0xea6   :  { %v1565_v10 = vsub.f32 1.0, %v1564_v6 }
 0xea7   :  { %2345 = vrcp.f32 %v1494_v57  ;;  %v1506_v8 = vand.u32 2147483648, %v1494_v57  ;;  %vm1500_vm5 = vweird.f32 %v1494_v57  ;;  %v1504_v12 = vand.u32 2147483647, %v1494_v57 }
 0xea8   :  { %v1566_v46 = vmul.f32 %v2342_v5, %v1565_v10 }
 0xea9   :  { %v1507_v18 = vor.u32 1.1754944e-38, %v1506_v8  ;;  %vm1505_vm9 = vcmp.eq.f32.partialorder %v1504_v12, 8.507059e+37 }
 0xeaa   :  { %v1567_v47 = vadd.f32 %v2342_v5, %v1566_v46 }
 0xeac   :  { %v1571_v15 = vsel %vm1570_vm2, %v2342_v5, %v1567_v47 }
 0xead   :  { %v1576_v52 = vsel %vm1573_vm3, %v1575_v50, %v1571_v15  ;;  %v2346_v58 = vpop.eup %2345 }
 0xeae   :  { %v1496_v59 = vmul.f32 %v2346_v58, %v1494_v57  ;;  %vm1501_vm4 = vweird.f32 %v2346_v58  ;;  %v1579_v24 = vmul.f32 %v1576_v52, %v2826_v36 }
 0xeaf   :  { %vm1502_vm6 = vmor %vm1500_vm5, %vm1501_vm4 }
 0xeb0   :  { %v1497_v60 = vsub.f32 1.0, %v1496_v59 }
 0xeb2   :  { %v1498_v63 = vmul.f32 %v2346_v58, %v1497_v60 }
 0xeb4   :  { %v1499_v7 = vadd.f32 %v2346_v58, %v1498_v63 }
 0xeb6   :  { %v1503_v16 = vsel %vm1502_vm6, %v2346_v58, %v1499_v7 }
 0xeb7   :  { %v1508_v21 = vsel %vm1505_vm9, %v1507_v18, %v1503_v16 }
 0xeb8   :  { %v1511_v14 = vmul.f32 %v1508_v21, %v2822_v61 }
 0xecc   :  { %v1582_v51 = vpop.permute.xlu2 %1581 }
 0xecd   :  { %v1584_v53 = vmul.f32 %v1582_v51, %v1576_v52 }
 0xecf   :  { %1586 = vrot.lane.b32.xlu1 %v1584_v53, %s2411_s2 }
 0xf0c   :  { %v1514_v22 = vpop.permute.xlu1 %1513 }
 0xf0d   :  { %v1516_v62 = vmul.f32 %v1514_v22, %v1508_v21 }
 0xf0f   :  { %1518 = vrot.lane.b32.xlu0 %v1516_v62, %s2411_s2 }
 0xf41   :  { %v1587_v25 = vpop.permute.xlu1 %1586 }
 0xf42   :  { %v2852_v27 = vadd.f32 %v1587_v25, %v1579_v24 }
 0xf44   :  { %2347 = vtanh.f32 %v2852_v27 }
 0xf4a   :  { %v2348_v28 = vpop.eup %2347 }
 0xf4b   :  { %1592 = vrot.lane.b32.xlu0 %v2348_v28, %s2406_s18 }
 0xf81   :  { %v1519_v32 = vpop.permute.xlu0 %1518 }
 0xf82   :  { %v2857_v33 = vadd.f32 %v1519_v32, %v1511_v14 }
 0xf84   :  { %2349 = vtanh.f32 %v2857_v33 }
 0xf8a   :  { %v2350_v26 = vpop.eup %2349 }
 0xf8b   :  { %1524 = vrot.lane.b32.xlu2 %v2350_v26, %s2406_s18 }
 0xfbd   :  { %v1593_v35 = vpop.permute.xlu0 %1592 }
 0xfbe   :  { %v1595_v36 = vmul.f32 %v1593_v35, %v1576_v52  ;;  %v1816_v35 = vld [vmem:[%s2983_s8 + $0x10] sm:$0xff] }
 0xfc0   :  { %1597 = vrot.lane.b32.xlu1 %v1595_v36, %s2411_s2  ;;  %v1815_v36 = vld [vmem:[%s2983_s8 + $0x8] sm:$0xff] }
 0xfe5   :  { %v1525_v34 = vpop.permute.xlu2 %1524 }
 0xfe6   :  { %v2862_v38 = vmul.f32 %v1525_v34, %v1508_v21 }
 0xfe8   :  { %1600 = vrot.lane.b32.xlu2 %v2862_v38, %s2406_s18 }
0x1032   :  { %v1598_v23 = vpop.permute.xlu1 %1597 }
0x1033   :  { %2167 = vmatmul.msk.f32.vlgmr.msrb.gmra.mxu0 %vm718_vm7, %v1598_v23 }
0x1042   :  { %v1601_v61 = vpop.permute.xlu2 %1600 }
0x1043   :  { %v1603_v29 = vsel %vm718_vm7, %v1598_v23, %v1601_v61 }
0x1044   :  { %2165 = vmatmul.msk.f32.vlgmr.msrb.gmra.mxu3 %vm788_vm8, %v1603_v29 }
0x10b0   :  { %v1691_v43 = vpop.f32.mrf.mxu0 }
0x10b1   :  { %v1694_v44 = vadd.f32 %v1691_v43, %v694_v42 }
0x10b3   :  { %2351 = vtanh.f32 %v1694_v44  ;;  %v2168_v1 = vmul.f32 -1.442695, %v1694_v44 }
0x10b9   :  { %v2352_v55 = vpop.eup %2351 }
0x10ba   :  { %1717 = vrot.lane.b32.xlu1 %v2352_v55, %s2406_s18  ;;  %v2918_v55 = vld [vmem:[%s2984_s9] ss:$0 sm:$0xff] }
0x10c7   :  { %v1624_v9 = vpop.f32.mrf.mxu3 }
0x10c8   :  { %v1625_v45 = vadd.f32 %v2874_v11, %v1624_v9 }
0x10ca   :  { %2353 = vtanh.f32 %v1625_v45  ;;  %v2166_v2 = vmul.f32 -1.442695, %v1625_v45 }
0x10cb   :  { %2355 = vpow2.f32 %v2168_v1 }
0x10d0   :  { %v2354_v0 = vpop.eup %2353 }
0x10d1   :  { %1649 = vrot.lane.b32.xlu0 %v2354_v0, %s2406_s18  ;;  %v2356_v37 = vpop.eup %2355 }
0x10d2   :  { %v1698_v17 = vadd.f32 1.0, %v2356_v37 }
0x10d4   :  { %2357 = vrcp.f32 %v1698_v17  ;;  %v1710_v46 = vand.u32 2147483648, %v1698_v17  ;;  %vm1704_vm11 = vweird.f32 %v1698_v17  ;;  %v1708_v47 = vand.u32 2147483647, %v1698_v17 }
0x10d5   :  { %2359 = vpow2.f32 %v2166_v2 }
0x10d6   :  { %v1711_v49 = vor.u32 1.1754944e-38, %v1710_v46  ;;  %vm1709_vm13 = vcmp.eq.f32.partialorder %v1708_v47, 8.507059e+37 }
0x10da   :  { %v2358_v19 = vpop.eup %2357 }
0x10db   :  { %v1700_v3 = vmul.f32 %v2358_v19, %v1698_v17  ;;  %v2360_v4 = vpop.eup %2359  ;;  %vm1705_vm10 = vweird.f32 %v2358_v19 }
0x10dc   :  { %v1630_v6 = vadd.f32 1.0, %v2360_v4  ;;  %vm1706_vm12 = vmor %vm1704_vm11, %vm1705_vm10 }
0x10dd   :  { %v1701_v13 = vsub.f32 1.0, %v1700_v3 }
0x10de   :  { %2361 = vrcp.f32 %v1630_v6  ;;  %v1642_v58 = vand.u32 2147483648, %v1630_v6  ;;  %vm1636_vm15 = vweird.f32 %v1630_v6  ;;  %v1640_v59 = vand.u32 2147483647, %v1630_v6 }
0x10df   :  { %v1702_v5 = vmul.f32 %v2358_v19, %v1701_v13 }
0x10e0   :  { %v1643_v63 = vor.u32 1.1754944e-38, %v1642_v58  ;;  %vm1641_vm1 = vcmp.eq.f32.partialorder %v1640_v59, 8.507059e+37 }
0x10e1   :  { %v1703_v10 = vadd.f32 %v2358_v19, %v1702_v5 }
0x10e3   :  { %v1707_v48 = vsel %vm1706_vm12, %v2358_v19, %v1703_v10 }
0x10e4   :  { %v1712_v50 = vsel %vm1709_vm13, %v1711_v49, %v1707_v48  ;;  %v2362_v51 = vpop.eup %2361 }
0x10e5   :  { %v1632_v53 = vmul.f32 %v2362_v51, %v1630_v6  ;;  %vm1637_vm14 = vweird.f32 %v2362_v51  ;;  %v1715_v21 = vmul.f32 %v1712_v50, %v2852_v27  ;;  %v1817_v27 = vld [vmem:[%s2983_s8 + $0x18] sm:$0xff] }
0x10e6   :  { %vm1638_vm0 = vmor %vm1636_vm15, %vm1637_vm14  ;;  %1858 = vmatpush.msra.mxu0 %v1817_v27 }
0x10e7   :  { %v1633_v54 = vsub.f32 1.0, %v1632_v53 }
0x10e8   :  { %1859 = vmatpush.msra.mxu0 %v1816_v35 }
0x10e9   :  { %v1634_v56 = vmul.f32 %v2362_v51, %v1633_v54 }
0x10ea   :  { %1860 = vmatpush.msra.mxu0 %v1815_v36 }
0x10eb   :  { %v1635_v57 = vadd.f32 %v2362_v51, %v1634_v56 }
0x10ed   :  { %v1639_v60 = vsel %vm1638_vm0, %v2362_v51, %v1635_v57 }
0x10ee   :  { %v1644_v8 = vsel %vm1641_vm1, %v1643_v63, %v1639_v60 }
0x10ef   :  { %v1647_v16 = vmul.f32 %v1644_v8, %v2857_v33 }
0x112c   :  { %v1718_v15 = vpop.permute.xlu1 %1717 }
0x112d   :  { %v1720_v52 = vmul.f32 %v1718_v15, %v1712_v50 }
0x112f   :  { %1722 = vrot.lane.b32.xlu0 %v1720_v52, %s2411_s2 }
0x1143   :  { %v1650_v7 = vpop.permute.xlu0 %1649 }
0x1144   :  { %v1652_v12 = vmul.f32 %v1650_v7, %v1644_v8 }
0x1146   :  { %1654 = vrot.lane.b32.xlu2 %v1652_v12, %s2411_s2 }
0x11a0   :  { %v1655_v18 = vpop.permute.xlu2 %1654 }
0x11a1   :  { %v2882_v22 = vadd.f32 %v1655_v18, %v1647_v16  ;;  %v1723_v62 = vpop.permute.xlu0 %1722 }
0x11a2   :  { %v1725_v24 = vadd.f32 %v1723_v62, %v1715_v21 }
0x11a3   :  { %2363 = vtanh.f32 %v2882_v22 }
0x11a4   :  { %2365 = vtanh.f32 %v1725_v24 }
0x11a9   :  { %v2364_v25 = vpop.eup %2363 }
0x11aa   :  { %v2366_v28 = vpop.eup %2365  ;;  %1660 = vrot.lane.b32.xlu1 %v2364_v25, %s2406_s18 }
0x11ab   :  { %1728 = vrot.lane.b32.xlu2 %v2366_v28, %s2406_s18 }
0x1205   :  { %v1729_v14 = vpop.permute.xlu2 %1728 }
0x1206   :  { %v1731_v32 = vmul.f32 %v1729_v14, %v1712_v50 }
0x1208   :  { %1733 = vrot.lane.b32.xlu0 %v1731_v32, %s2411_s2 }
0x121c   :  { %v1661_v33 = vpop.permute.xlu1 %1660 }
0x121d   :  { %v1663_v26 = vmul.f32 %v1661_v33, %v1644_v8 }
0x121f   :  { %1736 = vrot.lane.b32.xlu1 %v1663_v26, %s2406_s18 }
0x1227   :  { %850 = vrot.lane.b32.xlu1 %v2670_v20, %s2411_s2  ;;  %v1814_v20 = vld [vmem:[%s2983_s8] sm:$0xff] }
0x1228   :  { %1861 = vmatpush.msra.mxu0 %v1814_v20 }
0x122f   :  { %1121 = vrot.lane.b32.xlu1 %v2756_v40, %s2411_s2 }
0x1237   :  { %1529 = vrot.lane.b32.xlu1 %v2862_v38, %s2411_s2 }
0x127a   :  { %v1734_v40 = vpop.permute.xlu0 %1733 }
0x1291   :  { %v1737_v34 = vpop.permute.xlu1 %1736 }
0x1292   :  { %v1739_v38 = vsel %vm718_vm7, %v1734_v40, %v1737_v34 }
0x1293   :  { %2169 = vmatmul.msk.f32.vlgmr.msrb.gmra.mxu1 %vm788_vm8, %v1739_v38 }
0x1299   :  { %v851_v23 = vpop.permute.xlu1 %850 }
0x129a   :  { %853 = vst.msk [vmem:[#allocation3] sm:$0xff] %vm718_vm7, %v851_v23 }
0x12a1   :  { %v1122_v61 = vpop.permute.xlu1 %1121  ;;  %v1806_v29 = vld [vmem:[#allocation3] sm:$0xff] }
0x12a2   :  { %1125 = vst.msk [vmem:[#allocation3 + $0x10] sm:$0xff] %vm718_vm7, %v1122_v61  ;;  %2171 = vmatmul.msk.f32.vlgmr.msra.gmra.mxu0 %vm718_vm7, %v1806_v29 }
0x12a9   :  { %v1530_v41 = vpop.permute.xlu1 %1529  ;;  %v1808_v15 = vld [vmem:[#allocation3 + $0x10] sm:$0xff] }
0x12aa   :  { %1533 = vst.msk [vmem:[#allocation3 + $0x28] sm:$0xff] %vm718_vm7, %v1530_v41 }
0x12b1   :  { %v1811_v16 = vld [vmem:[#allocation3 + $0x28] sm:$0xff] }
0x1310   :  { %v1760_v42 = vpop.f32.mrf.mxu1 }
0x1311   :  { %v1761_v43 = vadd.f32 %v2874_v11, %v1760_v42 }
0x1313   :  { %2367 = vtanh.f32 %v1761_v43  ;;  %v2170_v11 = vmul.f32 -1.442695, %v1761_v43 }
0x1315   :  { %2369 = vpow2.f32 %v2170_v11 }
0x1319   :  { %v2368_v44 = vpop.eup %2367 }
0x131a   :  { %1785 = vrot.lane.b32.xlu2 %v2368_v44, %s2406_s18 }
0x131b   :  { %v2370_v0 = vpop.eup %2369 }
0x131c   :  { %v1766_v1 = vadd.f32 1.0, %v2370_v0 }
0x131e   :  { %2371 = vrcp.f32 %v1766_v1  ;;  %v1778_v13 = vand.u32 2147483648, %v1766_v1  ;;  %vm1772_vm2 = vweird.f32 %v1766_v1  ;;  %v1776_v4 = vand.u32 2147483647, %v1766_v1 }
0x131f   :  { %v1863_v9 = vpop.f32.mrf.mxu0 }
0x1320   :  { %v1864_v45 = vadd.f32 %v2918_v55, %v1863_v9  ;;  %v1779_v5 = vor.u32 1.1754944e-38, %v1778_v13  ;;  %vm1777_vm4 = vcmp.eq.f32.partialorder %v1776_v4, 8.507059e+37 }
0x1322   :  { %1887 = vst [vmem:[%s2985_s10] sm:$0xff] %v1864_v45  ;;  %985 = vrot.lane.b32.xlu2 %v2714_v30, %s2411_s2 }
0x1324   :  { %v2372_v37 = vpop.eup %2371 }
0x1325   :  { %v1768_v17 = vmul.f32 %v2372_v37, %v1766_v1  ;;  %vm1773_vm8 = vweird.f32 %v2372_v37 }
0x1326   :  { %vm1774_vm3 = vmor %vm1772_vm2, %vm1773_vm8 }
0x1327   :  { %v1769_v19 = vsub.f32 1.0, %v1768_v17 }
0x1329   :  { %v1770_v2 = vmul.f32 %v2372_v37, %v1769_v19 }
0x132a   :  { %1257 = vrot.lane.b32.xlu2 %v2795_v39, %s2411_s2 }
0x132b   :  { %v1771_v3 = vadd.f32 %v2372_v37, %v1770_v2 }
0x132d   :  { %v1775_v30 = vsel %vm1774_vm3, %v2372_v37, %v1771_v3 }
0x132e   :  { %v1780_v6 = vsel %vm1777_vm4, %v1779_v5, %v1775_v30 }
0x132f   :  { %v1783_v51 = vmul.f32 %v1780_v6, %v2882_v22 }
0x1332   :  { %1665 = vrot.lane.b32.xlu2 %v1663_v26, %s2411_s2 }
0x1374   :  { %v1786_v39 = vpop.permute.xlu2 %1785 }
0x1375   :  { %v1788_v10 = vmul.f32 %v1786_v39, %v1780_v6 }
0x1377   :  { %1790 = vrot.lane.b32.xlu0 %v1788_v10, %s2411_s2 }
0x137c   :  { %v986_v46 = vpop.permute.xlu2 %985 }
0x137d   :  { %989 = vst.msk [vmem:[#allocation3 + $0x8] sm:$0xff] %vm718_vm7, %v986_v46 }
0x1384   :  { %v1258_v47 = vpop.permute.xlu2 %1257  ;;  %v1807_v48 = vld [vmem:[#allocation3 + $0x8] sm:$0xff] }
0x1385   :  { %1261 = vst.msk [vmem:[#allocation3 + $0x18] sm:$0xff] %vm718_vm7, %v1258_v47  ;;  %2172 = vmatmul.msk.f32.gmra.mxu0 %vm718_vm7, %v1807_v48 }
0x138c   :  { %v1666_v49 = vpop.permute.xlu2 %1665  ;;  %v1809_v50 = vld [vmem:[#allocation3 + $0x18] sm:$0xff] }
0x138d   :  { %1669 = vst.msk [vmem:[#allocation3 + $0x30] sm:$0xff] %vm718_vm7, %v1666_v49  ;;  %2173 = vmatmul.msk.f32.gmra.mxu0 %vm718_vm7, %v1808_v15 }
0x1394   :  { %v1812_v18 = vld [vmem:[#allocation3 + $0x30] sm:$0xff] }
0x1395   :  { %2174 = vmatmul.msk.f32.gmra.mxu0 %vm718_vm7, %v1809_v50 }
0x13e9   :  { %v1791_v52 = vpop.permute.xlu0 %1790 }
0x13ea   :  { %v1793_v53 = vadd.f32 %v1791_v52, %v1783_v51 }
0x13ec   :  { %2373 = vtanh.f32 %v1793_v53 }
0x13f2   :  { %v2374_v54 = vpop.eup %2373 }
0x13f3   :  { %1796 = vrot.lane.b32.xlu0 %v2374_v54, %s2406_s18 }
0x13fb   :  { %1393 = vrot.lane.b32.xlu0 %v2835_v31, %s2411_s2 }
0x1402   :  { %v1866_v56 = vpop.f32.mrf.mxu0 }
0x1403   :  { %v1867_v57 = vadd.f32 %v2918_v55, %v1866_v56 }
0x1405   :  { %1888 = vst [vmem:[%s2985_s10 + $0x8] sm:$0xff] %v1867_v57 }
0x140a   :  { %v1869_v58 = vpop.f32.mrf.mxu0 }
0x140b   :  { %v1870_v59 = vadd.f32 %v2918_v55, %v1869_v58 }
0x140d   :  { %1889 = vst [vmem:[%s2985_s10 + $0x10] sm:$0xff] %v1870_v59 }
0x1412   :  { %v1872_v60 = vpop.f32.mrf.mxu0 }
0x1413   :  { %v1873_v63 = vadd.f32 %v2918_v55, %v1872_v60 }
0x1415   :  { %1890 = vst [vmem:[%s2985_s10 + $0x18] sm:$0xff] %v1873_v63 }
0x1465   :  { %v1797_v31 = vpop.permute.xlu0 %1796 }
0x1466   :  { %v1799_v7 = vmul.f32 %v1797_v31, %v1780_v6 }
0x1468   :  { %1801 = vrot.lane.b32.xlu0 %v1799_v7, %s2411_s2 }
0x146d   :  { %v1394_v8 = vpop.permute.xlu0 %1393 }
0x146e   :  { %1397 = vst.msk [vmem:[#allocation3 + $0x20] sm:$0xff] %vm718_vm7, %v1394_v8 }
0x1475   :  { %v1810_v12 = vld [vmem:[#allocation3 + $0x20] sm:$0xff] }
0x1476   :  { %2175 = vmatmul.msk.f32.gmra.mxu0 %vm718_vm7, %v1810_v12 }
0x147e   :  { %2176 = vmatmul.msk.f32.gmra.mxu0 %vm718_vm7, %v1811_v16 }
0x1486   :  { %2177 = vmatmul.msk.f32.gmra.mxu0 %vm718_vm7, %v1812_v18 }
0x14da   :  { %v1802_v21 = vpop.permute.xlu0 %1801 }
0x14db   :  { %1805 = vst.msk [vmem:[#allocation3 + $0x38] sm:$0xff] %vm718_vm7, %v1802_v21 }
0x14e2   :  { %v1813_v22 = vld [vmem:[#allocation3 + $0x38] sm:$0xff] }
0x14e3   :  { %2178 = vmatmul.msk.f32.gmra.mxu0 %vm718_vm7, %v1813_v22 }
0x14f3   :  { %v1875_v62 = vpop.f32.mrf.mxu0 }
0x14f4   :  { %v1876_v24 = vadd.f32 %v2918_v55, %v1875_v62 }
0x14f6   :  { %1891 = vst [vmem:[%s2985_s10 + $0x20] sm:$0xff] %v1876_v24 }
0x14fb   :  { %v1878_v25 = vpop.f32.mrf.mxu0 }
0x14fc   :  { %v1879_v28 = vadd.f32 %v2918_v55, %v1878_v25 }
0x14fe   :  { %1892 = vst [vmem:[%s2985_s10 + $0x28] sm:$0xff] %v1879_v28 }
0x1503   :  { %v1881_v14 = vpop.f32.mrf.mxu0 }
0x1504   :  { %v1882_v32 = vadd.f32 %v2918_v55, %v1881_v14 }
0x1506   :  { %1893 = vst [vmem:[%s2985_s10 + $0x30] sm:$0xff] %v1882_v32 }
0x1560   :  { %v1884_v33 = vpop.f32.mrf.mxu0 }
0x1561   :  { %v1885_v26 = vadd.f32 %v2918_v55, %v1884_v33 }
0x1563   :  { %1894 = vst [vmem:[%s2985_s10 + $0x38] sm:$0xff] %v1885_v26 }
0x1564   :  { %1899 = vsyncpa [#allocation5], 1 }

</bundles_post_ra>
